<compile_context>
chip_gen: v6e
topology: v6e:2x2x1
jax: 0.10.0
libtpu: 0.0.40
codegen_flags: <defaults>
</compile_context>

<pallas_src>
import functools

import jax
import jax.numpy as jnp
from jax.experimental import pallas as pl
from jax.experimental.pallas import tpu as pltpu


def _ffn_kernel(x_ref, w1_ref, b1_ref, w2_ref, b2_ref, gamma_ref, beta_ref,
                o_ref, acc_ref, *, eps):
    k = pl.program_id(1)

    @pl.when(k == 0)
    def _():
        acc_ref[...] = jnp.zeros_like(acc_ref)

    # Keep matmul operands in the input dtype (bf16-native MXU path); accumulate in f32.
    x = x_ref[...]
    h = jnp.dot(x, w1_ref[...], preferred_element_type=jnp.float32)
    h = h + b1_ref[...].astype(jnp.float32)
    h = jnp.maximum(h, 0.0).astype(w2_ref.dtype)
    acc_ref[...] += jnp.dot(h, w2_ref[...], preferred_element_type=jnp.float32)

    @pl.when(k == pl.num_programs(1) - 1)
    def _():
        # TODO(synk): dropout is identity in eval mode; training-mode dropout not implemented.
        y = acc_ref[...] + b2_ref[...].astype(jnp.float32) + x.astype(jnp.float32)

        # LayerNorm(d_in, eps) over the last dim, in f32.
        mean = jnp.mean(y, axis=-1, keepdims=True)
        centered = y - mean
        var = jnp.mean(centered * centered, axis=-1, keepdims=True)
        normed = centered * jax.lax.rsqrt(var + eps)
        out = normed * gamma_ref[...].astype(jnp.float32) + beta_ref[...].astype(jnp.float32)
        o_ref[...] = out.astype(o_ref.dtype)


def _round_up(v, m):
    return (v + m - 1) // m * m


def _pick_hid_tile(d_hid, max_tk):
    """Largest divisor of d_hid that is <= max_tk (falls back to d_hid)."""
    if d_hid <= max_tk:
        return d_hid
    for tk in range(max_tk, 127, -1):
        if d_hid % tk == 0:
            return tk
    return d_hid  # no reasonable divisor: keep the whole hidden dim resident


def positionwise_feed_forward(x, w1, b1, w2, b2, gamma, beta, *,
                              tm=None, hid_tile=None, eps=1e-6):
    """x: (batch, seq, d_in). Returns array of same shape/dtype.

    For best performance d_in and d_hid should be multiples of 128 (lane-dense tiles).
    """
    batch, seq, d_in = x.shape
    d_hid = w1.shape[1]
    M = batch * seq

    # Row tile: feed the MXU >=128 rows whenever possible; tune down on VMEM-tight parts.
    if tm is None:
        tm = 256 if M >= 256 else _round_up(M, 8)
    tm = max(8, min(tm, _round_up(M, 8)))

    # Hidden-dim reduction tile bounds the VMEM-resident weight slabs.
    if hid_tile is None:
        hid_tile = _pick_hid_tile(d_hid, 2048)
    assert d_hid % hid_tile == 0, "hid_tile must divide d_hid"
    nk = d_hid // hid_tile

    # Pad rows so the grid tiles evenly (padded rows are sliced off afterwards).
    M_pad = _round_up(M, tm)
    x2d = x.reshape(M, d_in)
    if M_pad != M:
        x2d = jnp.pad(x2d, ((0, M_pad - M), (0, 0)))

    b1_2d = b1.reshape(1, d_hid)
    b2_2d = b2.reshape(1, d_in)
    gamma_2d = gamma.reshape(1, d_in)
    beta_2d = beta.reshape(1, d_in)

    # Explicit scoped-VMEM budget (double-buffered inputs/outputs + f32 scratch + slack),
    # capped at 64 MiB so it is valid on every generation (v7x physical VMEM = 64 MiB).
    itemsize = x.dtype.itemsize
    est = (2 * tm * d_in * itemsize                       # x tile
           + 2 * d_in * hid_tile * w1.dtype.itemsize      # w1 chunk
           + 2 * hid_tile * d_in * w2.dtype.itemsize      # w2 chunk
           + 2 * tm * d_in * itemsize                     # output tile
           + tm * d_in * 4                                # f32 accumulator scratch
           + tm * hid_tile * 4                            # hidden intermediate
           + 8 * max(d_in, d_hid) * 4)                    # biases / gamma / beta
    vmem_limit = int(min(max(2 * est + (2 << 20), 32 << 20), 64 << 20))

    grid = (M_pad // tm, nk)

    out2d = pl.pallas_call(
        functools.partial(_ffn_kernel, eps=eps),
        out_shape=jax.ShapeDtypeStruct((M_pad, d_in), x.dtype),
        grid_spec=pltpu.PrefetchScalarGridSpec(
            num_scalar_prefetch=0,
            grid=grid,
            in_specs=[
                pl.BlockSpec((tm, d_in), lambda i, k: (i, 0)),        # x rows
                pl.BlockSpec((d_in, hid_tile), lambda i, k: (0, k)),  # w1 chunk
                pl.BlockSpec((1, hid_tile), lambda i, k: (0, k)),     # b1 chunk
                pl.BlockSpec((hid_tile, d_in), lambda i, k: (k, 0)),  # w2 chunk
                pl.BlockSpec((1, d_in), lambda i, k: (0, 0)),         # b2
                pl.BlockSpec((1, d_in), lambda i, k: (0, 0)),         # layernorm gamma
                pl.BlockSpec((1, d_in), lambda i, k: (0, 0)),         # layernorm beta
            ],
            out_specs=pl.BlockSpec((tm, d_in), lambda i, k: (i, 0)),
            scratch_shapes=[pltpu.VMEM((tm, d_in), jnp.float32)],
        ),
        compiler_params=pltpu.CompilerParams(
            dimension_semantics=("parallel", "arbitrary"),
            vmem_limit_bytes=vmem_limit,
        ),
    )(x2d, w1, b1_2d, w2, b2_2d, gamma_2d, beta_2d)

    return out2d[:M].reshape(batch, seq, d_in)


def init_params(key, d_in, d_hid, dtype=jnp.float32):
    """Deterministic init mimicking nn.Linear / nn.LayerNorm defaults."""
    k1, k2, k3, k4 = jax.random.split(key, 4)
    lim1 = 1.0 / jnp.sqrt(d_in)
    lim2 = 1.0 / jnp.sqrt(d_hid)
    # stored transposed relative to PyTorch (in, out) so kernel does x @ W
    w1 = jax.random.uniform(k1, (d_in, d_hid), dtype, -lim1, lim1)
    b1 = jax.random.uniform(k2, (d_hid,), dtype, -lim1, lim1)
    w2 = jax.random.uniform(k3, (d_hid, d_in), dtype, -lim2, lim2)
    b2 = jax.random.uniform(k4, (d_in,), dtype, -lim2, lim2)
    gamma = jnp.ones((d_in,), dtype)
    beta = jnp.zeros((d_in,), dtype)
    return w1, b1, w2, b2, gamma, beta


if __name__ == "__main__":
    batch, seq, d_in, d_hid = 2, 128, 128, 256   # lane-dense small shapes

    key = jax.random.PRNGKey(0)
    kx, kp = jax.random.split(key)
    x = jax.random.normal(kx, (batch, seq, d_in), jnp.float32)
    w1, b1, w2, b2, gamma, beta = init_params(kp, d_in, d_hid)

    # pure-JAX reference
    h = jnp.maximum(x @ w1 + b1, 0.0)
    y = h @ w2 + b2 + x
    mean = jnp.mean(y, axis=-1, keepdims=True)
    var = jnp.var(y, axis=-1, keepdims=True)
    ref = (y - mean) / jnp.sqrt(var + 1e-6) * gamma + beta

    # default path: single hidden chunk, large row tile
    out = positionwise_feed_forward(x, w1, b1, w2, b2, gamma, beta)
    out = jax.block_until_ready(out)
    assert jnp.allclose(out, ref, atol=1e-4, rtol=1e-4), "mismatch (single hid chunk)"

    # exercise the d_hid reduction axis + row-padding path
    out2 = positionwise_feed_forward(x[:, :100], w1, b1, w2, b2, gamma, beta,
                                     tm=64, hid_tile=128)
    out2 = jax.block_until_ready(out2)
    assert jnp.allclose(out2, ref[:, :100], atol=1e-4, rtol=1e-4), "mismatch (tiled hid)"

    print("KERNEL_OK")
</pallas_src>

<mosaic_0001>
module attributes {stable_mosaic.version = 11 : i64} {
  func.func @_ffn_kernel(%arg0: i32, %arg1: i32, %arg2: memref<256x128xf32, #tpu.memory_space<vmem>>, %arg3: memref<128x256xf32, #tpu.memory_space<vmem>>, %arg4: memref<1x256xf32, #tpu.memory_space<vmem>>, %arg5: memref<256x128xf32, #tpu.memory_space<vmem>>, %arg6: memref<1x128xf32, #tpu.memory_space<vmem>>, %arg7: memref<1x128xf32, #tpu.memory_space<vmem>>, %arg8: memref<1x128xf32, #tpu.memory_space<vmem>>, %arg9: memref<256x128xf32, #tpu.memory_space<vmem>>, %arg10: memref<256x128xf32, #tpu.memory_space<vmem>>) attributes {dimension_semantics = [#tpu.dimension_semantics<parallel>, #tpu.dimension_semantics<arbitrary>], iteration_bounds = array<i64: 1, 1>, scalar_prefetch = 0 : i64, scratch_operands = 1 : i64, tpu.core_type = #tpu.core_type<tc>, window_params = [{transform_indices = @transform_0, window_bounds = array<i64: 256, 128>}, {transform_indices = @transform_1, window_bounds = array<i64: 128, 256>}, {transform_indices = @transform_2, window_bounds = array<i64: 1, 256>}, {transform_indices = @transform_3, window_bounds = array<i64: 256, 128>}, {pipeline_mode = #tpu.pipeline_mode<synchronous>, transform_indices = @transform_4, window_bounds = array<i64: 1, 128>}, {pipeline_mode = #tpu.pipeline_mode<synchronous>, transform_indices = @transform_5, window_bounds = array<i64: 1, 128>}, {pipeline_mode = #tpu.pipeline_mode<synchronous>, transform_indices = @transform_6, window_bounds = array<i64: 1, 128>}, {transform_indices = @transform_7, window_bounds = array<i64: 256, 128>}]} {
    %c0_i32 = arith.constant 0 : i32
    %0 = arith.cmpi eq, %arg1, %c0_i32 : i32
    %1 = arith.extui %0 : i1 to i32
    %c0_i32_0 = arith.constant 0 : i32
    %2 = arith.cmpi ne, %1, %c0_i32_0 : i32
    scf.if %2 {
      %cst_16 = arith.constant 0.000000e+00 : f32
      %19 = vector.broadcast %cst_16 : f32 to vector<256x128xf32>
      %c0_17 = arith.constant 0 : index
      %c0_18 = arith.constant 0 : index
      %20 = vector.load %arg10[%c0_17, %c0_18] : memref<256x128xf32, #tpu.memory_space<vmem>>, vector<256x128xf32>
      tpu.vector_store %arg10[%c0_17, %c0_18], %19 {strides = array<i32>} : memref<256x128xf32, #tpu.memory_space<vmem>>, vector<256x128xf32>,
    } else {
    }
    %c0 = arith.constant 0 : index
    %c0_1 = arith.constant 0 : index
    %3 = vector.load %arg2[%c0, %c0_1] : memref<256x128xf32, #tpu.memory_space<vmem>>, vector<256x128xf32>
    %c0_2 = arith.constant 0 : index
    %c0_3 = arith.constant 0 : index
    %4 = vector.load %arg3[%c0_2, %c0_3] : memref<128x256xf32, #tpu.memory_space<vmem>>, vector<128x256xf32>
    %cst = arith.constant dense<0.000000e+00> : vector<256x256xf32>
    %5 = tpu.matmul %3, %4, %cst {dimension_numbers = #tpu.dot_dimension_numbers<[1], [0], [0], [1], [0, 0, 1, 1], [], []>} : vector<256x128xf32>, vector<128x256xf32>, vector<256x256xf32> -> vector<256x256xf32>
    %c0_4 = arith.constant 0 : index
    %c0_5 = arith.constant 0 : index
    %6 = vector.load %arg4[%c0_4, %c0_5] : memref<1x256xf32, #tpu.memory_space<vmem>>, vector<1x256xf32>
    %7 = vector.broadcast %6 : vector<1x256xf32> to vector<256x256xf32>
    %8 = arith.addf %5, %7 : vector<256x256xf32>
    %cst_6 = arith.constant 0.000000e+00 : f32
    %9 = vector.broadcast %cst_6 : f32 to vector<256x256xf32>
    %10 = arith.maximumf %8, %9 : vector<256x256xf32>
    %c0_7 = arith.constant 0 : index
    %c0_8 = arith.constant 0 : index
    %11 = vector.load %arg10[%c0_7, %c0_8] : memref<256x128xf32, #tpu.memory_space<vmem>>, vector<256x128xf32>
    %c0_9 = arith.constant 0 : index
    %c0_10 = arith.constant 0 : index
    %12 = vector.load %arg5[%c0_9, %c0_10] : memref<256x128xf32, #tpu.memory_space<vmem>>, vector<256x128xf32>
    %cst_11 = arith.constant dense<0.000000e+00> : vector<256x128xf32>
    %13 = tpu.matmul %10, %12, %cst_11 {dimension_numbers = #tpu.dot_dimension_numbers<[1], [0], [0], [1], [0, 0, 1, 1], [], []>} : vector<256x256xf32>, vector<256x128xf32>, vector<256x128xf32> -> vector<256x128xf32>
    %14 = arith.addf %11, %13 : vector<256x128xf32>
    %c0_12 = arith.constant 0 : index
    %c0_13 = arith.constant 0 : index
    %15 = vector.load %arg10[%c0_12, %c0_13] : memref<256x128xf32, #tpu.memory_space<vmem>>, vector<256x128xf32>
    tpu.vector_store %arg10[%c0_12, %c0_13], %14 {strides = array<i32>} : memref<256x128xf32, #tpu.memory_space<vmem>>, vector<256x128xf32>,
    %c0_i32_14 = arith.constant 0 : i32
    %16 = arith.cmpi eq, %arg1, %c0_i32_14 : i32
    %17 = arith.extui %16 : i1 to i32
    %c0_i32_15 = arith.constant 0 : i32
    %18 = arith.cmpi ne, %17, %c0_i32_15 : i32
    scf.if %18 {
      %c0_16 = arith.constant 0 : index
      %c0_17 = arith.constant 0 : index
      %19 = vector.load %arg10[%c0_16, %c0_17] : memref<256x128xf32, #tpu.memory_space<vmem>>, vector<256x128xf32>
      %c0_18 = arith.constant 0 : index
      %c0_19 = arith.constant 0 : index
      %20 = vector.load %arg6[%c0_18, %c0_19] : memref<1x128xf32, #tpu.memory_space<vmem>>, vector<1x128xf32>
      %21 = vector.broadcast %20 : vector<1x128xf32> to vector<256x128xf32>
      %22 = arith.addf %19, %21 : vector<256x128xf32>
      %23 = arith.addf %22, %3 : vector<256x128xf32>
      %cst_20 = arith.constant dense<0.000000e+00> : vector<256xf32>
      %24 = vector.multi_reduction <add>, %23, %cst_20 [1] : vector<256x128xf32> to vector<256xf32>
      %25 = vector.shape_cast %24 : vector<256xf32> to vector<256x1xf32>
      %cst_21 = arith.constant 1.280000e+02 : f32
      %26 = vector.broadcast %cst_21 : f32 to vector<256x1xf32>
      %27 = arith.divf %25, %26 : vector<256x1xf32>
      %28 = vector.broadcast %27 : vector<256x1xf32> to vector<256x128xf32>
      %29 = arith.subf %23, %28 : vector<256x128xf32>
      %30 = arith.mulf %29, %29 : vector<256x128xf32>
      %cst_22 = arith.constant dense<0.000000e+00> : vector<256xf32>
      %31 = vector.multi_reduction <add>, %30, %cst_22 [1] : vector<256x128xf32> to vector<256xf32>
      %32 = vector.shape_cast %31 : vector<256xf32> to vector<256x1xf32>
      %cst_23 = arith.constant 1.280000e+02 : f32
      %33 = vector.broadcast %cst_23 : f32 to vector<256x1xf32>
      %34 = arith.divf %32, %33 : vector<256x1xf32>
      %cst_24 = arith.constant 9.99999997E-7 : f32
      %35 = vector.broadcast %cst_24 : f32 to vector<256x1xf32>
      %36 = arith.addf %34, %35 : vector<256x1xf32>
      %37 = math.rsqrt %36 : vector<256x1xf32>
      %38 = vector.broadcast %37 : vector<256x1xf32> to vector<256x128xf32>
      %39 = arith.mulf %29, %38 : vector<256x128xf32>
      %c0_25 = arith.constant 0 : index
      %c0_26 = arith.constant 0 : index
      %40 = vector.load %arg7[%c0_25, %c0_26] : memref<1x128xf32, #tpu.memory_space<vmem>>, vector<1x128xf32>
      %41 = vector.broadcast %40 : vector<1x128xf32> to vector<256x128xf32>
      %42 = arith.mulf %39, %41 : vector<256x128xf32>
      %c0_27 = arith.constant 0 : index
      %c0_28 = arith.constant 0 : index
      %43 = vector.load %arg8[%c0_27, %c0_28] : memref<1x128xf32, #tpu.memory_space<vmem>>, vector<1x128xf32>
      %44 = vector.broadcast %43 : vector<1x128xf32> to vector<256x128xf32>
      %45 = arith.addf %42, %44 : vector<256x128xf32>
      %c0_29 = arith.constant 0 : index
      %c0_30 = arith.constant 0 : index
      %46 = vector.load %arg9[%c0_29, %c0_30] : memref<256x128xf32, #tpu.memory_space<vmem>>, vector<256x128xf32>
      tpu.vector_store %arg9[%c0_29, %c0_30], %45 {strides = array<i32>} : memref<256x128xf32, #tpu.memory_space<vmem>>, vector<256x128xf32>,
    } else {
    }
    return
  }
  func.func @transform_0(%arg0: i32, %arg1: i32) -> (i32, i32) {
    %c0_i32 = arith.constant 0 : i32
    %c0_i32_0 = arith.constant 0 : i32
    return %arg0, %c0_i32 : i32, i32
  }
  func.func @transform_1(%arg0: i32, %arg1: i32) -> (i32, i32) {
    %c0_i32 = arith.constant 0 : i32
    %c0_i32_0 = arith.constant 0 : i32
    return %c0_i32, %arg1 : i32, i32
  }
  func.func @transform_2(%arg0: i32, %arg1: i32) -> (i32, i32) {
    %c0_i32 = arith.constant 0 : i32
    %c0_i32_0 = arith.constant 0 : i32
    return %c0_i32, %arg1 : i32, i32
  }
  func.func @transform_3(%arg0: i32, %arg1: i32) -> (i32, i32) {
    %c0_i32 = arith.constant 0 : i32
    %c0_i32_0 = arith.constant 0 : i32
    return %arg1, %c0_i32 : i32, i32
  }
  func.func @transform_4(%arg0: i32, %arg1: i32) -> (i32, i32) {
    %c0_i32 = arith.constant 0 : i32
    %c0_i32_0 = arith.constant 0 : i32
    %c0_i32_1 = arith.constant 0 : i32
    return %c0_i32, %c0_i32_0 : i32, i32
  }
  func.func @transform_5(%arg0: i32, %arg1: i32) -> (i32, i32) {
    %c0_i32 = arith.constant 0 : i32
    %c0_i32_0 = arith.constant 0 : i32
    %c0_i32_1 = arith.constant 0 : i32
    return %c0_i32, %c0_i32_0 : i32, i32
  }
  func.func @transform_6(%arg0: i32, %arg1: i32) -> (i32, i32) {
    %c0_i32 = arith.constant 0 : i32
    %c0_i32_0 = arith.constant 0 : i32
    %c0_i32_1 = arith.constant 0 : i32
    return %c0_i32, %c0_i32_0 : i32, i32
  }
  func.func @transform_7(%arg0: i32, %arg1: i32) -> (i32, i32) {
    %c0_i32 = arith.constant 0 : i32
    %c0_i32_0 = arith.constant 0 : i32
    return %arg0, %c0_i32 : i32, i32
  }
}

</mosaic_0001>

<bundles_post_ra>
// kernel: tpu_custom_call.1
= control target key start
LH: loop header
LB: loop body
LE: loop exit
PB: predicated region body
PF: predicated region fallthrough
CT: control target
= control target key end

     0   :  { %12 = vsyncpa [#allocation4], 0  ;;  %s2429_s0 = inlined_call_operand.hbm [shape: f32[256,128], index: 0, kind: input, shape index: {}]   ;;  %s2430_s1 = inlined_call_operand.hbm [shape: f32[128,256], index: 1, kind: input, shape index: {}]   ;;  %s2431_s2 = inlined_call_operand.vmem [shape: f32[1,256], index: 2, kind: input, shape index: {}]   ;;  %s2432_s3 = inlined_call_operand.hbm [shape: f32[256,128], index: 3, kind: input, shape index: {}]   ;;  %s2433_s4 = inlined_call_operand.vmem [shape: f32[1,128], index: 4, kind: input, shape index: {}]   ;;  %s2434_s5 = inlined_call_operand.vmem [shape: f32[1,128], index: 5, kind: input, shape index: {}]   ;;  %s2435_s6 = inlined_call_operand.vmem [shape: f32[1,128], index: 6, kind: input, shape index: {}]   ;;  %s2436_s7 = inlined_call_operand.hbm [shape: f32[256,128], index: 7, kind: output, shape index: {}]  }
   0x1   :  { %13 = vsyncpa [#allocation7], 0 }
   0x2   :  { %14 = vsyncpa [#allocation5], 0  ;;  %s1669_s24 = smov [#allocation6]  }
   0x3   :  { %s32_s25 = sshll.u32 %s1669_s24, 4  ;;  %s33_s25 = int_to_ptr.vmem [resolvable:$true] %s32_s25 }
   0x4   :  { %s1591_s26 = scalar_lea.vmem %s33_s25, 4096  ;;  %p1596_p1 = scmp.lt.s32.totalorder %s33_s25, %s33_s25 }
   0x5   :  { %p1592_p0 = scmp.ne.s32.totalorder %s33_s25, %s1591_s26  ;;  %p1597_p2 = scmp.lt.s32.totalorder %s1591_s26, %s1591_s26 }
   0x7   :  { %p1598_p3 = por %p1597_p2, %p1596_p1 }
   0x9   :  { %p1599_p4 = pnand %p1598_p3, %p1592_p0 }
   0xb   :  { %1602 = shalt.err (!%p1599_p4)
}
   0xc   :  { %s1670_s27 = smov 256   ;;  %s1671_s28 = smov 16  }
   0xd   :  { %38 = dma.hbm_to_vmem [thread:$0]  %s2430_s1, 4096, %s33_s25, [#allocation7], %s1670_s27, %s1670_s27, %s1671_s28  }
   0xe   :  { %s1672_s8 = smov [#allocation3]  }
   0xf   :  { %s20_s9 = sshll.u32 %s1672_s8, 4  ;;  %s21_s9 = int_to_ptr.vmem [resolvable:$true] %s20_s9 }
  0x10   :  { %s1611_s10 = scalar_lea.vmem %s21_s9, 4096  ;;  %p1616_p6 = scmp.lt.s32.totalorder %s21_s9, %s21_s9 }
  0x11   :  { %p1612_p5 = scmp.ne.s32.totalorder %s21_s9, %s1611_s10  ;;  %p1617_p7 = scmp.lt.s32.totalorder %s1611_s10, %s1611_s10 }
  0x13   :  { %p1618_p8 = por %p1617_p7, %p1616_p6 }
  0x15   :  { %p1619_p9 = pnand %p1618_p8, %p1612_p5 }
  0x17   :  { %1622 = shalt.err (!%p1619_p9)
}
  0x18   :  { %s1673_s11 = smov 128   ;;  %s1674_s12 = smov 8  }
  0x19   :  { %26 = dma.hbm_to_vmem [thread:$0]  %s2429_s0, 4096, %s21_s9, [#allocation4], %s1673_s11, %s1673_s11, %s1674_s12  }
  0x1a   :  { %s1675_s1 = smov [#allocation8]  }
  0x1b   :  { %s46_s15 = sshll.u32 %s1675_s1, 4  ;;  %s47_s15 = int_to_ptr.vmem [resolvable:$true] %s46_s15 }
  0x1c   :  { %s1631_s16 = scalar_lea.vmem %s47_s15, 4096  ;;  %p1636_p11 = scmp.lt.s32.totalorder %s47_s15, %s47_s15 }
  0x1d   :  { %p1632_p10 = scmp.ne.s32.totalorder %s47_s15, %s1631_s16  ;;  %p1637_p12 = scmp.lt.s32.totalorder %s1631_s16, %s1631_s16 }
  0x1f   :  { %p1638_p13 = por %p1637_p12, %p1636_p11 }
  0x21   :  { %p1639_p0 = pnand %p1638_p13, %p1632_p10 }
  0x23   :  { %1642 = shalt.err (!%p1639_p0)
}
  0x24   :  { %52 = dma.hbm_to_vmem [thread:$0]  %s2432_s3, 4096, %s47_s15, [#allocation7], %s1673_s11, %s1673_s11, %s1674_s12  }
  0x25   :  { %1663 = dma.done.wait [#allocation4], 4096  }
  0x26   :  { %1664 = vsyncadd [#allocation4], 4294963200 }
  0x27   :  { %1665 = dma.done.wait [#allocation7], 8192  }
  0x28   :  { %1666 = vsyncadd [#allocation7], 4294959104  ;;  %v1676_v0 = vmov 0.0   ;;  %v167_v1 = vld [vmem:[#allocation6 + $0xf8] sm:$0xff]  ;;  %v166_v2 = vld [vmem:[#allocation6 + $0xf0] sm:$0xff] }
  0x29   :  { %244 = vmatprep.mubr.f32.mxu0 %v1676_v0  ;;  %1444 = vmatprep.subr.mxu1 %v1676_v0  ;;  %v165_v3 = vld [vmem:[#allocation6 + $0xe8] sm:$0xff]  ;;  %v164_v4 = vld [vmem:[#allocation6 + $0xe0] sm:$0xff]  ;;  %v163_v5 = vld [vmem:[#allocation6 + $0xd8] sm:$0xff] }
  0x2a   :  { %180 = vmatprep.subr.mxu0 %v167_v1  ;;  %v162_v6 = vld [vmem:[#allocation6 + $0xd0] sm:$0xff]  ;;  %v161_v7 = vld [vmem:[#allocation6 + $0xc8] sm:$0xff]  ;;  %v160_v8 = vld [vmem:[#allocation6 + $0xc0] sm:$0xff] }
  0x2b   :  { %181 = vmatpush1.msra.mxu0 %v166_v2  ;;  %v159_v9 = vld [vmem:[#allocation6 + $0xb8] sm:$0xff]  ;;  %v158_v10 = vld [vmem:[#allocation6 + $0xb0] sm:$0xff]  ;;  %v157_v11 = vld [vmem:[#allocation6 + $0xa8] sm:$0xff] }
  0x2c   :  { %182 = vmatprep.subr.mxu0 %v165_v3  ;;  %v156_v12 = vld [vmem:[#allocation6 + $0xa0] sm:$0xff]  ;;  %v155_v13 = vld [vmem:[#allocation6 + $0x98] sm:$0xff]  ;;  %v154_v14 = vld [vmem:[#allocation6 + $0x90] sm:$0xff] }
  0x2d   :  { %183 = vmatpush1.msra.mxu0 %v164_v4  ;;  %v153_v15 = vld [vmem:[#allocation6 + $0x88] sm:$0xff]  ;;  %v152_v16 = vld [vmem:[#allocation6 + $0x80] sm:$0xff]  ;;  %v151_v17 = vld [vmem:[#allocation6 + $0x78] sm:$0xff] }
  0x2e   :  { %184 = vmatprep.subr.mxu0 %v163_v5  ;;  %v150_v18 = vld [vmem:[#allocation6 + $0x70] sm:$0xff]  ;;  %v149_v19 = vld [vmem:[#allocation6 + $0x68] sm:$0xff]  ;;  %v148_v20 = vld [vmem:[#allocation6 + $0x60] sm:$0xff] }
  0x2f   :  { %185 = vmatpush1.msra.mxu0 %v162_v6  ;;  %v147_v21 = vld [vmem:[#allocation6 + $0x58] sm:$0xff]  ;;  %v146_v22 = vld [vmem:[#allocation6 + $0x50] sm:$0xff]  ;;  %v145_v23 = vld [vmem:[#allocation6 + $0x48] sm:$0xff] }
  0x30   :  { %186 = vmatprep.subr.mxu0 %v161_v7  ;;  %v144_v24 = vld [vmem:[#allocation6 + $0x40] sm:$0xff]  ;;  %v143_v25 = vld [vmem:[#allocation6 + $0x38] sm:$0xff]  ;;  %v142_v26 = vld [vmem:[#allocation6 + $0x30] sm:$0xff] }
  0x31   :  { %187 = vmatpush1.msra.mxu0 %v160_v8  ;;  %v141_v27 = vld [vmem:[#allocation6 + $0x28] sm:$0xff]  ;;  %v140_v28 = vld [vmem:[#allocation6 + $0x20] sm:$0xff]  ;;  %v139_v29 = vld [vmem:[#allocation6 + $0x18] sm:$0xff] }
  0x32   :  { %188 = vmatprep.subr.mxu0 %v159_v9  ;;  %v138_v30 = vld [vmem:[#allocation6 + $0x10] sm:$0xff]  ;;  %v137_v31 = vld [vmem:[#allocation6 + $0x8] sm:$0xff]  ;;  %v136_v32 = vld [vmem:[#allocation6] sm:$0xff] }
  0x33   :  { %189 = vmatpush1.msra.mxu0 %v158_v10  ;;  %v548_v33 = vld [vmem:[#allocation8 + $0x78] sm:$0xff]  ;;  %v104_v34 = vld [vmem:[#allocation3] sm:$0xff]  ;;  %v547_v35 = vld [vmem:[#allocation8 + $0x70] sm:$0xff] }
  0x34   :  { %190 = vmatprep.subr.mxu0 %v157_v11  ;;  %1476 = vmatpush1.msra.mxu1 %v548_v33  ;;  %v105_v36 = vld [vmem:[#allocation3 + $0x8] sm:$0xff]  ;;  %v545_v38 = vld [vmem:[#allocation8 + $0x60] sm:$0xff]  ;;  %v1742_v39 = vld [vmem:[#allocation3 + $0x10] sm:$0xff] }
  0x35   :  { %191 = vmatpush1.msra.mxu0 %v156_v12  ;;  %1445 = vmatprep.subr.mxu1 %v1676_v0  ;;  %v546_v37 = vld [vmem:[#allocation8 + $0x68] sm:$0xff]  ;;  %v544_v40 = vld [vmem:[#allocation8 + $0x58] sm:$0xff]  ;;  %v543_v41 = vld [vmem:[#allocation8 + $0x50] sm:$0xff] }
  0x36   :  { %192 = vmatprep.subr.mxu0 %v155_v13  ;;  %1477 = vmatpush1.msra.mxu1 %v547_v35  ;;  %v1749_v42 = vld [vmem:[#allocation3 + $0x18] sm:$0xff]  ;;  %v542_v43 = vld [vmem:[#allocation8 + $0x48] sm:$0xff]  ;;  %v541_v44 = vld [vmem:[#allocation8 + $0x40] sm:$0xff] }
  0x37   :  { %193 = vmatpush1.msra.mxu0 %v154_v14  ;;  %1446 = vmatprep.subr.mxu1 %v1676_v0  ;;  %v1756_v45 = vld [vmem:[#allocation3 + $0x20] sm:$0xff]  ;;  %v540_v46 = vld [vmem:[#allocation8 + $0x38] sm:$0xff]  ;;  %v539_v47 = vld [vmem:[#allocation8 + $0x30] sm:$0xff] }
  0x38   :  { %194 = vmatprep.subr.mxu0 %v153_v15  ;;  %1478 = vmatpush1.msra.mxu1 %v546_v37  ;;  %v1763_v48 = vld [vmem:[#allocation3 + $0x28] sm:$0xff]  ;;  %v537_v50 = vld [vmem:[#allocation8 + $0x20] sm:$0xff]  ;;  %v1770_v51 = vld [vmem:[#allocation3 + $0x30] sm:$0xff] }
  0x39   :  { %195 = vmatpush1.msra.mxu0 %v152_v16  ;;  %1447 = vmatprep.subr.mxu1 %v1676_v0  ;;  %v538_v49 = vld [vmem:[#allocation8 + $0x28] sm:$0xff]  ;;  %v536_v52 = vld [vmem:[#allocation8 + $0x18] sm:$0xff]  ;;  %v535_v53 = vld [vmem:[#allocation8 + $0x10] sm:$0xff] }
  0x3a   :  { %196 = vmatprep.subr.mxu0 %v151_v17  ;;  %1479 = vmatpush1.msra.mxu1 %v545_v38  ;;  %v1777_v54 = vld [vmem:[#allocation3 + $0x38] sm:$0xff]  ;;  %v534_v55 = vld [vmem:[#allocation8 + $0x8] sm:$0xff]  ;;  %v533_v56 = vld [vmem:[#allocation8] sm:$0xff] }
  0x3b   :  { %197 = vmatpush1.msra.mxu0 %v150_v18  ;;  %1448 = vmatprep.subr.mxu1 %v1676_v0  ;;  %v1784_v57 = vld [vmem:[#allocation3 + $0x40] sm:$0xff]  ;;  %v564_v58 = vld [vmem:[#allocation8 + $0xf8] sm:$0xff]  ;;  %v563_v59 = vld [vmem:[#allocation8 + $0xf0] sm:$0xff] }
  0x3c   :  { %198 = vmatprep.subr.mxu0 %v149_v19  ;;  %1480 = vmatpush1.msra.mxu1 %v544_v40  ;;  %v1791_v60 = vld [vmem:[#allocation3 + $0x48] sm:$0xff]  ;;  %v561_v62 = vld [vmem:[#allocation8 + $0xe0] sm:$0xff]  ;;  %v1798_v63 = vld [vmem:[#allocation3 + $0x50] sm:$0xff] }
  0x3d   :  { %199 = vmatpush1.msra.mxu0 %v148_v20  ;;  %1449 = vmatprep.subr.mxu1 %v1676_v0  ;;  %v562_v61 = vld [vmem:[#allocation8 + $0xe8] sm:$0xff]  ;;  %v560_v1 = vld [vmem:[#allocation8 + $0xd8] sm:$0xff]  ;;  %v559_v3 = vld [vmem:[#allocation8 + $0xd0] sm:$0xff] }
  0x3e   :  { %200 = vmatprep.subr.mxu0 %v147_v21  ;;  %1481 = vmatpush1.msra.mxu1 %v543_v41  ;;  %v1805_v2 = vld [vmem:[#allocation3 + $0x58] sm:$0xff]  ;;  %v1811_v4 = vld [vmem:[#allocation8 + $0xc8] sm:$0xff]  ;;  %v1814_v5 = vld [vmem:[#allocation3 + $0x60] sm:$0xff] }
  0x3f   :  { %201 = vmatpush1.msra.mxu0 %v146_v22  ;;  %1450 = vmatprep.subr.mxu1 %v1676_v0  ;;  %v557_v6 = vld [vmem:[#allocation8 + $0xc0] sm:$0xff]  ;;  %v1822_v7 = vld [vmem:[#allocation3 + $0x68] sm:$0xff]  ;;  %v556_v8 = vld [vmem:[#allocation8 + $0xb8] sm:$0xff] }
  0x40   :  { %202 = vmatprep.subr.mxu0 %v145_v23  ;;  %1482 = vmatpush1.msra.mxu1 %v542_v43  ;;  %v555_v9 = vld [vmem:[#allocation8 + $0xb0] sm:$0xff]  ;;  %v554_v11 = vld [vmem:[#allocation8 + $0xa8] sm:$0xff]  ;;  %v1836_v12 = vld [vmem:[#allocation3 + $0x78] sm:$0xff] }
  0x41   :  { %203 = vmatpush1.msra.mxu0 %v144_v24  ;;  %1451 = vmatprep.subr.mxu1 %v1676_v0  ;;  %v1829_v10 = vld [vmem:[#allocation3 + $0x70] sm:$0xff]  ;;  %v553_v13 = vld [vmem:[#allocation8 + $0xa0] sm:$0xff]  ;;  %v552_v15 = vld [vmem:[#allocation8 + $0x98] sm:$0xff] }
  0x42   :  { %204 = vmatprep.subr.mxu0 %v143_v25  ;;  %1483 = vmatpush1.msra.mxu1 %v541_v44  ;;  %v1843_v14 = vld [vmem:[#allocation3 + $0x80] sm:$0xff]  ;;  %v1850_v16 = vld [vmem:[#allocation3 + $0x88] sm:$0xff]  ;;  %v551_v17 = vld [vmem:[#allocation8 + $0x90] sm:$0xff] }
  0x43   :  { %205 = vmatpush1.msra.mxu0 %v142_v26  ;;  %1452 = vmatprep.subr.mxu1 %v1676_v0  ;;  %v550_v18 = vld [vmem:[#allocation8 + $0x88] sm:$0xff]  ;;  %v1857_v19 = vld [vmem:[#allocation3 + $0x90] sm:$0xff]  ;;  %v549_v20 = vld [vmem:[#allocation8 + $0x80] sm:$0xff] }
  0x44   :  { %206 = vmatprep.subr.mxu0 %v141_v27  ;;  %1484 = vmatpush1.msra.mxu1 %v540_v46  ;;  %v1865_v21 = vld [vmem:[#allocation3 + $0x98] sm:$0xff]  ;;  %v1870_v22 = vld [vmem:[#allocation3 + $0xa0] sm:$0xff]  ;;  %v1876_v23 = vld [vmem:[#allocation3 + $0xa8] sm:$0xff] }
  0x45   :  { %207 = vmatpush1.msra.mxu0 %v140_v28  ;;  %1453 = vmatprep.subr.mxu1 %v1676_v0  ;;  %v1882_v24 = vld [vmem:[#allocation3 + $0xb0] sm:$0xff]  ;;  %v1888_v25 = vld [vmem:[#allocation3 + $0xb8] sm:$0xff]  ;;  %v1892_v26 = vld [vmem:[#allocation3 + $0xc0] sm:$0xff] }
  0x46   :  { %208 = vmatprep.subr.mxu0 %v139_v29  ;;  %1485 = vmatpush1.msra.mxu1 %v539_v47  ;;  %v1896_v27 = vld [vmem:[#allocation3 + $0xc8] sm:$0xff]  ;;  %v1900_v28 = vld [vmem:[#allocation3 + $0xd0] sm:$0xff]  ;;  %v1904_v29 = vld [vmem:[#allocation3 + $0xd8] sm:$0xff] }
  0x47   :  { %209 = vmatpush1.msra.mxu0 %v138_v30  ;;  %1454 = vmatprep.subr.mxu1 %v1676_v0  ;;  %v1908_v30 = vld [vmem:[#allocation3 + $0xe0] sm:$0xff] }
  0x48   :  { %210 = vmatprep.subr.mxu0 %v137_v31  ;;  %1486 = vmatpush1.msra.mxu1 %v538_v49  ;;  %v1912_v31 = vld [vmem:[#allocation3 + $0xe8] sm:$0xff] }
  0x49   :  { %211 = vmatpush1.msra.mxu0 %v136_v32  ;;  %1455 = vmatprep.subr.mxu1 %v1676_v0  ;;  %v1916_v32 = vld [vmem:[#allocation3 + $0xf0] sm:$0xff] }
  0x4a   :  { %245 = vmatmul.mubr.f32.vlgmr.msra.gmra.mxu0 %v104_v34  ;;  %565 = vmatprep.subr.mxu0 %v1676_v0  ;;  %v170_v34 = vlaneseq }
  0x4b   :  { %250 = vmatprep.mubr.f32.mxu0 %v1676_v0  ;;  %566 = vmatpush1.msra.mxu0 %v548_v33  ;;  %v1920_v33 = vld [vmem:[#allocation3 + $0xf8] sm:$0xff] }
  0x4c   :  { %567 = vmatprep.subr.mxu0 %v1676_v0  ;;  %1487 = vmatpush1.msra.mxu1 %v537_v50 }
  0x4d   :  { %568 = vmatpush1.msra.mxu0 %v547_v35  ;;  %1456 = vmatprep.subr.mxu1 %v1676_v0  ;;  %v171_v35 = vshrl.u32 %v170_v34, 7 }
  0x4e   :  { %251 = vmatmul.mubr.f32.gmra.mxu0 %v105_v36  ;;  %569 = vmatprep.subr.mxu0 %v1676_v0 }
  0x4f   :  { %256 = vmatprep.mubr.f32.mxu0 %v1676_v0  ;;  %570 = vmatpush1.msra.mxu0 %v546_v37  ;;  %v172_v36 = vsub.s32 0, %v171_v35  ;;  %v168_v37 = vld [vmem:[%s2431_s2] sm:$0x3] }
  0x50   :  { %571 = vmatprep.subr.mxu0 %v1676_v0  ;;  %1488 = vmatpush1.msra.mxu1 %v536_v52 }
  0x51   :  { %572 = vmatpush1.msra.mxu0 %v545_v38  ;;  %1457 = vmatprep.subr.mxu1 %v1676_v0  ;;  %v176_v38 = vsub.s32 1, %v171_v35 }
  0x52   :  { %257 = vmatmul.mubr.f32.gmra.mxu0 %v1742_v39  ;;  %573 = vmatprep.subr.mxu0 %v1676_v0 }
  0x53   :  { %262 = vmatprep.mubr.f32.mxu0 %v1676_v0  ;;  %574 = vmatpush1.msra.mxu0 %v544_v40  ;;  %v1926_v40 = vrot.slane %v168_v37, %v172_v36 }
  0x54   :  { %575 = vmatprep.subr.mxu0 %v1676_v0  ;;  %1489 = vmatpush1.msra.mxu1 %v535_v53 }
  0x55   :  { %576 = vmatpush1.msra.mxu0 %v543_v41  ;;  %1458 = vmatprep.subr.mxu1 %v1676_v0  ;;  %v1928_v41 = vrot.slane %v168_v37, %v176_v38 }
  0x56   :  { %263 = vmatmul.mubr.f32.gmra.mxu0 %v1749_v42  ;;  %577 = vmatprep.subr.mxu0 %v1676_v0 }
  0x57   :  { %268 = vmatprep.mubr.f32.mxu0 %v1676_v0  ;;  %578 = vmatpush1.msra.mxu0 %v542_v43 }
  0x58   :  { %579 = vmatprep.subr.mxu0 %v1676_v0  ;;  %1490 = vmatpush1.msra.mxu1 %v534_v55 }
  0x59   :  { %580 = vmatpush1.msra.mxu0 %v541_v44  ;;  %1459 = vmatprep.subr.mxu1 %v1676_v0 }
  0x5a   :  { %269 = vmatmul.mubr.f32.gmra.mxu0 %v1756_v45  ;;  %581 = vmatprep.subr.mxu0 %v1676_v0 }
  0x5b   :  { %274 = vmatprep.mubr.f32.mxu0 %v1676_v0  ;;  %582 = vmatpush1.msra.mxu0 %v540_v46 }
  0x5c   :  { %583 = vmatprep.subr.mxu0 %v1676_v0  ;;  %1491 = vmatpush1.msra.mxu1 %v533_v56 }
  0x5d   :  { %584 = vmatpush1.msra.mxu0 %v539_v47  ;;  %1460 = vmatprep.subr.mxu1 %v1676_v0 }
  0x5e   :  { %275 = vmatmul.mubr.f32.gmra.mxu0 %v1763_v48  ;;  %585 = vmatprep.subr.mxu0 %v1676_v0 }
  0x5f   :  { %280 = vmatprep.mubr.f32.mxu0 %v1676_v0  ;;  %586 = vmatpush1.msra.mxu0 %v538_v49 }
  0x60   :  { %587 = vmatprep.subr.mxu0 %v1676_v0  ;;  %1492 = vmatpush2.msra.mxu1 %v564_v58 }
  0x61   :  { %588 = vmatpush1.msra.mxu0 %v537_v50  ;;  %1461 = vmatprep.subr.mxu1 %v1676_v0 }
  0x62   :  { %281 = vmatmul.mubr.f32.gmra.mxu0 %v1770_v51  ;;  %589 = vmatprep.subr.mxu0 %v1676_v0 }
  0x63   :  { %286 = vmatprep.mubr.f32.mxu0 %v1676_v0  ;;  %590 = vmatpush1.msra.mxu0 %v536_v52 }
  0x64   :  { %591 = vmatprep.subr.mxu0 %v1676_v0  ;;  %1493 = vmatpush2.msra.mxu1 %v563_v59 }
  0x65   :  { %592 = vmatpush1.msra.mxu0 %v535_v53  ;;  %1462 = vmatprep.subr.mxu1 %v1676_v0 }
  0x66   :  { %287 = vmatmul.mubr.f32.gmra.mxu0 %v1777_v54  ;;  %593 = vmatprep.subr.mxu0 %v1676_v0 }
  0x67   :  { %292 = vmatprep.mubr.f32.mxu0 %v1676_v0  ;;  %594 = vmatpush1.msra.mxu0 %v534_v55 }
  0x68   :  { %595 = vmatprep.subr.mxu0 %v1676_v0  ;;  %1494 = vmatpush2.msra.mxu1 %v562_v61 }
  0x69   :  { %596 = vmatpush1.msra.mxu0 %v533_v56  ;;  %1463 = vmatprep.subr.mxu1 %v1676_v0 }
  0x6a   :  { %293 = vmatmul.mubr.f32.gmra.mxu0 %v1784_v57  ;;  %597 = vmatprep.subr.mxu0 %v1676_v0 }
  0x6b   :  { %298 = vmatprep.mubr.f32.mxu0 %v1676_v0  ;;  %598 = vmatpush2.msra.mxu0 %v564_v58 }
  0x6c   :  { %599 = vmatprep.subr.mxu0 %v1676_v0  ;;  %1495 = vmatpush2.msra.mxu1 %v561_v62 }
  0x6d   :  { %600 = vmatpush2.msra.mxu0 %v563_v59  ;;  %1464 = vmatprep.subr.mxu1 %v1676_v0 }
  0x6e   :  { %299 = vmatmul.mubr.f32.gmra.mxu0 %v1791_v60  ;;  %601 = vmatprep.subr.mxu0 %v1676_v0 }
  0x6f   :  { %304 = vmatprep.mubr.f32.mxu0 %v1676_v0  ;;  %602 = vmatpush2.msra.mxu0 %v562_v61 }
  0x70   :  { %603 = vmatprep.subr.mxu0 %v1676_v0  ;;  %1496 = vmatpush2.msra.mxu1 %v560_v1 }
  0x71   :  { %604 = vmatpush2.msra.mxu0 %v561_v62  ;;  %1465 = vmatprep.subr.mxu1 %v1676_v0 }
  0x72   :  { %305 = vmatmul.mubr.f32.gmra.mxu0 %v1798_v63  ;;  %605 = vmatprep.subr.mxu0 %v1676_v0 }
  0x73   :  { %310 = vmatprep.mubr.f32.mxu0 %v1676_v0  ;;  %606 = vmatpush2.msra.mxu0 %v560_v1 }
  0x74   :  { %607 = vmatprep.subr.mxu0 %v1676_v0  ;;  %1497 = vmatpush2.msra.mxu1 %v559_v3 }
  0x75   :  { %608 = vmatpush2.msra.mxu0 %v559_v3  ;;  %1466 = vmatprep.subr.mxu1 %v1676_v0 }
  0x76   :  { %311 = vmatmul.mubr.f32.gmra.mxu0 %v1805_v2  ;;  %609 = vmatprep.subr.mxu0 %v1676_v0 }
  0x77   :  { %316 = vmatprep.mubr.f32.mxu0 %v1676_v0  ;;  %610 = vmatpush2.msra.mxu0 %v1811_v4 }
  0x78   :  { %611 = vmatprep.subr.mxu0 %v1676_v0  ;;  %1498 = vmatpush2.msra.mxu1 %v1811_v4 }
  0x79   :  { %612 = vmatpush2.msra.mxu0 %v557_v6  ;;  %1467 = vmatprep.subr.mxu1 %v1676_v0 }
  0x7a   :  { %317 = vmatmul.mubr.f32.gmra.mxu0 %v1814_v5  ;;  %613 = vmatprep.subr.mxu0 %v1676_v0 }
  0x7b   :  { %322 = vmatprep.mubr.f32.mxu0 %v1676_v0  ;;  %614 = vmatpush2.msra.mxu0 %v556_v8 }
  0x7c   :  { %615 = vmatprep.subr.mxu0 %v1676_v0  ;;  %1499 = vmatpush2.msra.mxu1 %v557_v6 }
  0x7d   :  { %616 = vmatpush2.msra.mxu0 %v555_v9  ;;  %1468 = vmatprep.subr.mxu1 %v1676_v0 }
  0x7e   :  { %323 = vmatmul.mubr.f32.gmra.mxu0 %v1822_v7  ;;  %617 = vmatprep.subr.mxu0 %v1676_v0 }
  0x7f   :  { %328 = vmatprep.mubr.f32.mxu0 %v1676_v0  ;;  %618 = vmatpush2.msra.mxu0 %v554_v11 }
  0x80   :  { %619 = vmatprep.subr.mxu0 %v1676_v0  ;;  %1500 = vmatpush2.msra.mxu1 %v556_v8 }
  0x81   :  { %620 = vmatpush2.msra.mxu0 %v553_v13  ;;  %1469 = vmatprep.subr.mxu1 %v1676_v0 }
  0x82   :  { %329 = vmatmul.mubr.f32.gmra.mxu0 %v1829_v10  ;;  %621 = vmatprep.subr.mxu0 %v1676_v0 }
  0x83   :  { %334 = vmatprep.mubr.f32.mxu0 %v1676_v0  ;;  %622 = vmatpush2.msra.mxu0 %v552_v15 }
  0x84   :  { %623 = vmatprep.subr.mxu0 %v1676_v0  ;;  %1501 = vmatpush2.msra.mxu1 %v555_v9 }
  0x85   :  { %624 = vmatpush2.msra.mxu0 %v551_v17  ;;  %1470 = vmatprep.subr.mxu1 %v1676_v0 }
  0x86   :  { %335 = vmatmul.mubr.f32.gmra.mxu0 %v1836_v12  ;;  %625 = vmatprep.subr.mxu0 %v1676_v0 }
  0x87   :  { %340 = vmatprep.mubr.f32.mxu0 %v1676_v0  ;;  %626 = vmatpush2.msra.mxu0 %v550_v18 }
  0x88   :  { %627 = vmatprep.subr.mxu0 %v1676_v0  ;;  %1502 = vmatpush2.msra.mxu1 %v554_v11 }
  0x89   :  { %628 = vmatpush2.msra.mxu0 %v549_v20  ;;  %1471 = vmatprep.subr.mxu1 %v1676_v0 }
  0x8a   :  { %341 = vmatmul.mubr.f32.gmra.mxu0 %v1843_v14  ;;  %1503 = vmatpush2.msra.mxu1 %v553_v13 }
  0x8b   :  { %346 = vmatprep.mubr.f32.mxu0 %v1676_v0  ;;  %1472 = vmatprep.subr.mxu1 %v1676_v0 }
  0x8c   :  { %1504 = vmatpush2.msra.mxu1 %v552_v15 }
  0x8d   :  { %1473 = vmatprep.subr.mxu1 %v1676_v0 }
  0x8e   :  { %347 = vmatmul.mubr.f32.gmra.mxu0 %v1850_v16  ;;  %1505 = vmatpush2.msra.mxu1 %v551_v17 }
  0x8f   :  { %352 = vmatprep.mubr.f32.mxu0 %v1676_v0  ;;  %1474 = vmatprep.subr.mxu1 %v1676_v0 }
  0x90   :  { %1506 = vmatpush2.msra.mxu1 %v550_v18 }
  0x91   :  { %1475 = vmatprep.subr.mxu1 %v1676_v0 }
  0x92   :  { %353 = vmatmul.mubr.f32.gmra.mxu0 %v1857_v19  ;;  %1507 = vmatpush2.msra.mxu1 %v549_v20 }
  0x93   :  { %358 = vmatprep.mubr.f32.mxu0 %v1676_v0 }
  0x96   :  { %359 = vmatmul.mubr.f32.gmra.mxu0 %v1865_v21 }
  0x97   :  { %364 = vmatprep.mubr.f32.mxu0 %v1676_v0 }
  0x9a   :  { %365 = vmatmul.mubr.f32.gmra.mxu0 %v1870_v22 }
  0x9b   :  { %370 = vmatprep.mubr.f32.mxu0 %v1676_v0 }
  0x9e   :  { %371 = vmatmul.mubr.f32.gmra.mxu0 %v1876_v23 }
  0x9f   :  { %376 = vmatprep.mubr.f32.mxu0 %v1676_v0 }
  0xa2   :  { %377 = vmatmul.mubr.f32.gmra.mxu0 %v1882_v24 }
  0xa3   :  { %382 = vmatprep.mubr.f32.mxu0 %v1676_v0 }
  0xa6   :  { %383 = vmatmul.mubr.f32.gmra.mxu0 %v1888_v25 }
  0xa7   :  { %388 = vmatprep.mubr.f32.mxu0 %v1676_v0 }
  0xaa   :  { %389 = vmatmul.mubr.f32.gmra.mxu0 %v1892_v26 }
  0xab   :  { %394 = vmatprep.mubr.f32.mxu0 %v1676_v0 }
  0xae   :  { %395 = vmatmul.mubr.f32.gmra.mxu0 %v1896_v27 }
  0xaf   :  { %400 = vmatprep.mubr.f32.mxu0 %v1676_v0 }
  0xb2   :  { %401 = vmatmul.mubr.f32.gmra.mxu0 %v1900_v28 }
  0xb3   :  { %406 = vmatprep.mubr.f32.mxu0 %v1676_v0 }
  0xb6   :  { %407 = vmatmul.mubr.f32.gmra.mxu0 %v1904_v29 }
  0xb7   :  { %412 = vmatprep.mubr.f32.mxu0 %v1676_v0 }
  0xba   :  { %413 = vmatmul.mubr.f32.gmra.mxu0 %v1908_v30 }
  0xbb   :  { %418 = vmatprep.mubr.f32.mxu0 %v1676_v0 }
  0xbe   :  { %419 = vmatmul.mubr.f32.gmra.mxu0 %v1912_v31 }
  0xbf   :  { %424 = vmatprep.mubr.f32.mxu0 %v1676_v0 }
  0xc2   :  { %425 = vmatmul.mubr.f32.gmra.mxu0 %v1916_v32 }
  0xc3   :  { %430 = vmatprep.mubr.f32.mxu0 %v1676_v0 }
  0xc6   :  { %431 = vmatmul.mubr.f32.gmra.mxu0 %v1920_v33 }
 0x10a   :  { %v246_v43 = vpop.f32.mrf.mxu0 }
 0x10b   :  { %v247_v44 = vadd.f32 %v246_v43, %v1926_v40 }
 0x10c   :  { %v248_v0 = vpop.f32.mrf.mxu0 }
 0x10d   :  { %v249_v46 = vadd.f32 %v248_v0, %v1928_v41  ;;  %v437_v50 = vmax.f32 %v247_v44, 0.0 }
 0x10e   :  { %v252_v47 = vpop.f32.mrf.mxu0 }
 0x10f   :  { %v438_v49 = vmax.f32 %v249_v46, 0.0  ;;  %v253_v52 = vadd.f32 %v252_v47, %v1926_v40 }
 0x110   :  { %v254_v53 = vpop.f32.mrf.mxu0 }
 0x111   :  { %v255_v55 = vadd.f32 %v254_v53, %v1928_v41  ;;  %629 = vmatprep.mubr.f32.mxu0 %v438_v49  ;;  %v439_v59 = vmax.f32 %v253_v52, 0.0 }
 0x112   :  { %v258_v56 = vpop.f32.mrf.mxu0  ;;  %630 = vmatmul.mubr.f32.vlgmr.msra.gmra.mxu0 %v437_v50 }
 0x113   :  { %v440_v58 = vmax.f32 %v255_v55, 0.0  ;;  %v259_v61 = vadd.f32 %v258_v56, %v1926_v40 }
 0x114   :  { %v260_v62 = vpop.f32.mrf.mxu0 }
 0x115   :  { %v261_v1 = vadd.f32 %v260_v62, %v1928_v41  ;;  %634 = vmatprep.mubr.f32.mxu0 %v440_v58  ;;  %v441_v6 = vmax.f32 %v259_v61, 0.0 }
 0x116   :  { %v264_v3 = vpop.f32.mrf.mxu0  ;;  %635 = vmatmul.mubr.f32.gmra.mxu0 %v439_v59 }
 0x117   :  { %v442_v4 = vmax.f32 %v261_v1, 0.0  ;;  %v265_v8 = vadd.f32 %v264_v3, %v1926_v40 }
 0x118   :  { %v266_v9 = vpop.f32.mrf.mxu0 }
 0x119   :  { %v267_v11 = vadd.f32 %v266_v9, %v1928_v41  ;;  %639 = vmatprep.mubr.f32.mxu0 %v442_v4  ;;  %v443_v17 = vmax.f32 %v265_v8, 0.0 }
 0x11a   :  { %v270_v13 = vpop.f32.mrf.mxu0  ;;  %640 = vmatmul.mubr.f32.gmra.mxu0 %v441_v6 }
 0x11b   :  { %v444_v15 = vmax.f32 %v267_v11, 0.0  ;;  %v271_v18 = vadd.f32 %v270_v13, %v1926_v40 }
 0x11c   :  { %v272_v20 = vpop.f32.mrf.mxu0 }
 0x11d   :  { %644 = vmatprep.mubr.f32.mxu0 %v444_v15  ;;  %v273_v34 = vadd.f32 %v272_v20, %v1928_v41  ;;  %v445_v37 = vmax.f32 %v271_v18, 0.0 }
 0x11e   :  { %v276_v35 = vpop.f32.mrf.mxu0  ;;  %645 = vmatmul.mubr.f32.gmra.mxu0 %v443_v17 }
 0x11f   :  { %v446_v36 = vmax.f32 %v273_v34, 0.0  ;;  %v277_v38 = vadd.f32 %v276_v35, %v1926_v40 }
 0x120   :  { %v278_v43 = vpop.f32.mrf.mxu0 }
 0x121   :  { %v279_v44 = vadd.f32 %v278_v43, %v1928_v41  ;;  %649 = vmatprep.mubr.f32.mxu1 %v446_v36  ;;  %v447_v47 = vmax.f32 %v277_v38, 0.0 }
 0x122   :  { %v282_v0 = vpop.f32.mrf.mxu0  ;;  %650 = vmatmul.mubr.f32.vlgmr.msra.gmra.mxu1 %v445_v37 }
 0x123   :  { %v448_v46 = vmax.f32 %v279_v44, 0.0  ;;  %v283_v49 = vadd.f32 %v282_v0, %v1926_v40 }
 0x124   :  { %v284_v50 = vpop.f32.mrf.mxu0 }
 0x125   :  { %v285_v52 = vadd.f32 %v284_v50, %v1928_v41  ;;  %654 = vmatprep.mubr.f32.mxu1 %v448_v46  ;;  %v449_v56 = vmax.f32 %v283_v49, 0.0 }
 0x126   :  { %v288_v53 = vpop.f32.mrf.mxu0  ;;  %655 = vmatmul.mubr.f32.gmra.mxu1 %v447_v47 }
 0x127   :  { %v450_v55 = vmax.f32 %v285_v52, 0.0  ;;  %v289_v58 = vadd.f32 %v288_v53, %v1926_v40 }
 0x128   :  { %v290_v59 = vpop.f32.mrf.mxu0 }
 0x129   :  { %v291_v61 = vadd.f32 %v290_v59, %v1928_v41  ;;  %659 = vmatprep.mubr.f32.mxu1 %v450_v55  ;;  %v451_v3 = vmax.f32 %v289_v58, 0.0 }
 0x12a   :  { %v294_v62 = vpop.f32.mrf.mxu0  ;;  %660 = vmatmul.mubr.f32.gmra.mxu1 %v449_v56 }
 0x12b   :  { %v452_v1 = vmax.f32 %v291_v61, 0.0  ;;  %v295_v4 = vadd.f32 %v294_v62, %v1926_v40 }
 0x12c   :  { %v296_v6 = vpop.f32.mrf.mxu0 }
 0x12d   :  { %v297_v8 = vadd.f32 %v296_v6, %v1928_v41  ;;  %664 = vmatprep.mubr.f32.mxu1 %v452_v1  ;;  %v453_v13 = vmax.f32 %v295_v4, 0.0 }
 0x12e   :  { %v300_v9 = vpop.f32.mrf.mxu0  ;;  %665 = vmatmul.mubr.f32.gmra.mxu1 %v451_v3 }
 0x12f   :  { %v454_v11 = vmax.f32 %v297_v8, 0.0  ;;  %v301_v15 = vadd.f32 %v300_v9, %v1926_v40 }
 0x130   :  { %v302_v17 = vpop.f32.mrf.mxu0 }
 0x131   :  { %v303_v18 = vadd.f32 %v302_v17, %v1928_v41  ;;  %669 = vmatprep.mubr.f32.mxu1 %v454_v11  ;;  %v455_v35 = vmax.f32 %v301_v15, 0.0 }
 0x132   :  { %v306_v20 = vpop.f32.mrf.mxu0  ;;  %670 = vmatmul.mubr.f32.gmra.mxu1 %v453_v13 }
 0x133   :  { %v456_v34 = vmax.f32 %v303_v18, 0.0  ;;  %v307_v36 = vadd.f32 %v306_v20, %v1926_v40 }
 0x134   :  { %v308_v37 = vpop.f32.mrf.mxu0 }
 0x135   :  { %v309_v38 = vadd.f32 %v308_v37, %v1928_v41  ;;  %674 = vmatprep.mubr.f32.mxu1 %v456_v34  ;;  %v457_v0 = vmax.f32 %v307_v36, 0.0 }
 0x136   :  { %v312_v43 = vpop.f32.mrf.mxu0  ;;  %675 = vmatmul.mubr.f32.gmra.mxu1 %v455_v35 }
 0x137   :  { %v458_v44 = vmax.f32 %v309_v38, 0.0  ;;  %v313_v46 = vadd.f32 %v312_v43, %v1926_v40 }
 0x138   :  { %v314_v47 = vpop.f32.mrf.mxu0 }
 0x139   :  { %v315_v49 = vadd.f32 %v314_v47, %v1928_v41  ;;  %679 = vmatprep.mubr.f32.mxu1 %v458_v44  ;;  %v459_v53 = vmax.f32 %v313_v46, 0.0 }
 0x13a   :  { %v318_v50 = vpop.f32.mrf.mxu0  ;;  %680 = vmatmul.mubr.f32.gmra.mxu1 %v457_v0 }
 0x13b   :  { %v460_v52 = vmax.f32 %v315_v49, 0.0  ;;  %v319_v55 = vadd.f32 %v318_v50, %v1926_v40 }
 0x13c   :  { %v320_v56 = vpop.f32.mrf.mxu0 }
 0x13d   :  { %v321_v58 = vadd.f32 %v320_v56, %v1928_v41  ;;  %684 = vmatprep.mubr.f32.mxu1 %v460_v52  ;;  %v461_v62 = vmax.f32 %v319_v55, 0.0 }
 0x13e   :  { %v324_v59 = vpop.f32.mrf.mxu0  ;;  %685 = vmatmul.mubr.f32.gmra.mxu1 %v459_v53 }
 0x13f   :  { %v462_v61 = vmax.f32 %v321_v58, 0.0  ;;  %v325_v1 = vadd.f32 %v324_v59, %v1926_v40 }
 0x140   :  { %v326_v3 = vpop.f32.mrf.mxu0 }
 0x141   :  { %v327_v4 = vadd.f32 %v326_v3, %v1928_v41  ;;  %689 = vmatprep.mubr.f32.mxu1 %v462_v61  ;;  %v463_v9 = vmax.f32 %v325_v1, 0.0 }
 0x142   :  { %v330_v6 = vpop.f32.mrf.mxu0  ;;  %690 = vmatmul.mubr.f32.gmra.mxu1 %v461_v62 }
 0x143   :  { %v464_v8 = vmax.f32 %v327_v4, 0.0  ;;  %v331_v11 = vadd.f32 %v330_v6, %v1926_v40 }
 0x144   :  { %v332_v13 = vpop.f32.mrf.mxu0 }
 0x145   :  { %v333_v15 = vadd.f32 %v332_v13, %v1928_v41  ;;  %694 = vmatprep.mubr.f32.mxu1 %v464_v8  ;;  %v465_v20 = vmax.f32 %v331_v11, 0.0 }
 0x146   :  { %v336_v17 = vpop.f32.mrf.mxu0  ;;  %695 = vmatmul.mubr.f32.gmra.mxu1 %v463_v9 }
 0x147   :  { %v466_v18 = vmax.f32 %v333_v15, 0.0  ;;  %v337_v34 = vadd.f32 %v336_v17, %v1926_v40 }
 0x148   :  { %v338_v35 = vpop.f32.mrf.mxu0 }
 0x149   :  { %v339_v36 = vadd.f32 %v338_v35, %v1928_v41  ;;  %699 = vmatprep.mubr.f32.mxu1 %v466_v18  ;;  %v467_v43 = vmax.f32 %v337_v34, 0.0 }
 0x14a   :  { %v342_v37 = vpop.f32.mrf.mxu0  ;;  %700 = vmatmul.mubr.f32.gmra.mxu1 %v465_v20 }
 0x14b   :  { %v468_v38 = vmax.f32 %v339_v36, 0.0  ;;  %v343_v44 = vadd.f32 %v342_v37, %v1926_v40 }
 0x14c   :  { %v344_v0 = vpop.f32.mrf.mxu0 }
 0x14d   :  { %v345_v46 = vadd.f32 %v344_v0, %v1928_v41  ;;  %704 = vmatprep.mubr.f32.mxu1 %v468_v38  ;;  %v469_v50 = vmax.f32 %v343_v44, 0.0 }
 0x14e   :  { %v348_v47 = vpop.f32.mrf.mxu0  ;;  %705 = vmatmul.mubr.f32.gmra.mxu1 %v467_v43 }
 0x14f   :  { %v470_v49 = vmax.f32 %v345_v46, 0.0  ;;  %v349_v52 = vadd.f32 %v348_v47, %v1926_v40 }
 0x150   :  { %v350_v53 = vpop.f32.mrf.mxu0 }
 0x151   :  { %v351_v55 = vadd.f32 %v350_v53, %v1928_v41  ;;  %709 = vmatprep.mubr.f32.mxu1 %v470_v49  ;;  %v471_v59 = vmax.f32 %v349_v52, 0.0 }
 0x152   :  { %v354_v56 = vpop.f32.mrf.mxu0  ;;  %710 = vmatmul.mubr.f32.gmra.mxu1 %v469_v50 }
 0x153   :  { %v472_v58 = vmax.f32 %v351_v55, 0.0  ;;  %v355_v61 = vadd.f32 %v354_v56, %v1926_v40 }
 0x154   :  { %v356_v62 = vpop.f32.mrf.mxu0 }
 0x155   :  { %v357_v1 = vadd.f32 %v356_v62, %v1928_v41  ;;  %714 = vmatprep.mubr.f32.mxu1 %v472_v58  ;;  %v473_v6 = vmax.f32 %v355_v61, 0.0 }
 0x156   :  { %v360_v3 = vpop.f32.mrf.mxu0  ;;  %715 = vmatmul.mubr.f32.gmra.mxu1 %v471_v59 }
 0x157   :  { %v474_v4 = vmax.f32 %v357_v1, 0.0  ;;  %v361_v8 = vadd.f32 %v360_v3, %v1926_v40 }
 0x158   :  { %v362_v9 = vpop.f32.mrf.mxu0 }
 0x159   :  { %v363_v11 = vadd.f32 %v362_v9, %v1928_v41  ;;  %719 = vmatprep.mubr.f32.mxu1 %v474_v4  ;;  %v475_v17 = vmax.f32 %v361_v8, 0.0 }
 0x15a   :  { %v366_v13 = vpop.f32.mrf.mxu0  ;;  %720 = vmatmul.mubr.f32.gmra.mxu1 %v473_v6 }
 0x15b   :  { %v476_v15 = vmax.f32 %v363_v11, 0.0  ;;  %v367_v18 = vadd.f32 %v366_v13, %v1926_v40 }
 0x15c   :  { %v368_v20 = vpop.f32.mrf.mxu0 }
 0x15d   :  { %v369_v34 = vadd.f32 %v368_v20, %v1928_v41  ;;  %724 = vmatprep.mubr.f32.mxu1 %v476_v15  ;;  %v477_v37 = vmax.f32 %v367_v18, 0.0 }
 0x15e   :  { %v372_v35 = vpop.f32.mrf.mxu0  ;;  %725 = vmatmul.mubr.f32.gmra.mxu1 %v475_v17 }
 0x15f   :  { %v478_v36 = vmax.f32 %v369_v34, 0.0  ;;  %v373_v38 = vadd.f32 %v372_v35, %v1926_v40 }
 0x160   :  { %v374_v43 = vpop.f32.mrf.mxu0 }
 0x161   :  { %v375_v44 = vadd.f32 %v374_v43, %v1928_v41  ;;  %729 = vmatprep.mubr.f32.mxu1 %v478_v36  ;;  %v479_v47 = vmax.f32 %v373_v38, 0.0 }
 0x162   :  { %v378_v0 = vpop.f32.mrf.mxu0  ;;  %730 = vmatmul.mubr.f32.gmra.mxu1 %v477_v37 }
 0x163   :  { %v480_v46 = vmax.f32 %v375_v44, 0.0  ;;  %v379_v49 = vadd.f32 %v378_v0, %v1926_v40 }
 0x164   :  { %v380_v50 = vpop.f32.mrf.mxu0 }
 0x165   :  { %v381_v52 = vadd.f32 %v380_v50, %v1928_v41  ;;  %734 = vmatprep.mubr.f32.mxu1 %v480_v46  ;;  %v481_v56 = vmax.f32 %v379_v49, 0.0 }
 0x166   :  { %v384_v53 = vpop.f32.mrf.mxu0  ;;  %735 = vmatmul.mubr.f32.gmra.mxu1 %v479_v47 }
 0x167   :  { %v482_v55 = vmax.f32 %v381_v52, 0.0  ;;  %v385_v58 = vadd.f32 %v384_v53, %v1926_v40 }
 0x168   :  { %v386_v59 = vpop.f32.mrf.mxu0 }
 0x169   :  { %v387_v61 = vadd.f32 %v386_v59, %v1928_v41  ;;  %739 = vmatprep.mubr.f32.mxu1 %v482_v55  ;;  %v483_v3 = vmax.f32 %v385_v58, 0.0 }
 0x16a   :  { %v390_v62 = vpop.f32.mrf.mxu0  ;;  %740 = vmatmul.mubr.f32.gmra.mxu1 %v481_v56 }
 0x16b   :  { %v484_v1 = vmax.f32 %v387_v61, 0.0  ;;  %v391_v4 = vadd.f32 %v390_v62, %v1926_v40 }
 0x16c   :  { %v392_v6 = vpop.f32.mrf.mxu0 }
 0x16d   :  { %v393_v8 = vadd.f32 %v392_v6, %v1928_v41  ;;  %744 = vmatprep.mubr.f32.mxu1 %v484_v1  ;;  %v485_v13 = vmax.f32 %v391_v4, 0.0 }
 0x16e   :  { %v396_v9 = vpop.f32.mrf.mxu0  ;;  %745 = vmatmul.mubr.f32.gmra.mxu1 %v483_v3 }
 0x16f   :  { %v486_v11 = vmax.f32 %v393_v8, 0.0  ;;  %v397_v15 = vadd.f32 %v396_v9, %v1926_v40 }
 0x170   :  { %v398_v17 = vpop.f32.mrf.mxu0 }
 0x171   :  { %v399_v18 = vadd.f32 %v398_v17, %v1928_v41  ;;  %749 = vmatprep.mubr.f32.mxu1 %v486_v11  ;;  %v487_v35 = vmax.f32 %v397_v15, 0.0 }
 0x172   :  { %v402_v20 = vpop.f32.mrf.mxu0  ;;  %750 = vmatmul.mubr.f32.gmra.mxu1 %v485_v13 }
 0x173   :  { %v488_v34 = vmax.f32 %v399_v18, 0.0  ;;  %v403_v36 = vadd.f32 %v402_v20, %v1926_v40 }
 0x174   :  { %v404_v37 = vpop.f32.mrf.mxu0 }
 0x175   :  { %v405_v38 = vadd.f32 %v404_v37, %v1928_v41  ;;  %754 = vmatprep.mubr.f32.mxu1 %v488_v34  ;;  %v489_v0 = vmax.f32 %v403_v36, 0.0 }
 0x176   :  { %v408_v43 = vpop.f32.mrf.mxu0  ;;  %755 = vmatmul.mubr.f32.gmra.mxu1 %v487_v35 }
 0x177   :  { %v490_v44 = vmax.f32 %v405_v38, 0.0  ;;  %v409_v46 = vadd.f32 %v408_v43, %v1926_v40  ;;  %v1997_v43 = vld [vmem:[%s2433_s4] ss:$0 sm:$0xff] }
 0x178   :  { %v410_v47 = vpop.f32.mrf.mxu0 }
 0x179   :  { %v411_v49 = vadd.f32 %v410_v47, %v1928_v41  ;;  %759 = vmatprep.mubr.f32.mxu1 %v490_v44  ;;  %v491_v53 = vmax.f32 %v409_v46, 0.0  ;;  %v1581_v47 = vld [vmem:[#allocation3] sm:$0xff] }
 0x17a   :  { %v414_v50 = vpop.f32.mrf.mxu0  ;;  %760 = vmatmul.mubr.f32.gmra.mxu1 %v489_v0 }
 0x17b   :  { %v492_v52 = vmax.f32 %v411_v49, 0.0  ;;  %v415_v55 = vadd.f32 %v414_v50, %v1926_v40 }
 0x17c   :  { %v416_v56 = vpop.f32.mrf.mxu0 }
 0x17d   :  { %v417_v58 = vadd.f32 %v416_v56, %v1928_v41  ;;  %764 = vmatprep.mubr.f32.mxu1 %v492_v52  ;;  %v493_v62 = vmax.f32 %v415_v55, 0.0  ;;  %v1582_v52 = vld [vmem:[#allocation3 + $0x8] sm:$0xff] }
 0x17e   :  { %v420_v59 = vpop.f32.mrf.mxu0  ;;  %765 = vmatmul.mubr.f32.gmra.mxu1 %v491_v53 }
 0x17f   :  { %v494_v61 = vmax.f32 %v417_v58, 0.0  ;;  %v421_v1 = vadd.f32 %v420_v59, %v1926_v40 }
 0x180   :  { %v422_v3 = vpop.f32.mrf.mxu0 }
 0x181   :  { %v423_v4 = vadd.f32 %v422_v3, %v1928_v41  ;;  %769 = vmatprep.mubr.f32.mxu1 %v494_v61  ;;  %v495_v9 = vmax.f32 %v421_v1, 0.0 }
 0x182   :  { %v426_v6 = vpop.f32.mrf.mxu0  ;;  %770 = vmatmul.mubr.f32.gmra.mxu1 %v493_v62 }
 0x183   :  { %v496_v8 = vmax.f32 %v423_v4, 0.0  ;;  %v427_v11 = vadd.f32 %v426_v6, %v1926_v40 }
 0x184   :  { %v428_v13 = vpop.f32.mrf.mxu0 }
 0x185   :  { %v429_v15 = vadd.f32 %v428_v13, %v1928_v41  ;;  %774 = vmatprep.mubr.f32.mxu1 %v496_v8  ;;  %v497_v20 = vmax.f32 %v427_v11, 0.0 }
 0x186   :  { %v432_v17 = vpop.f32.mrf.mxu0  ;;  %775 = vmatmul.mubr.f32.gmra.mxu1 %v495_v9 }
 0x187   :  { %v498_v18 = vmax.f32 %v429_v15, 0.0  ;;  %v433_v34 = vadd.f32 %v432_v17, %v1926_v40 }
 0x188   :  { %v434_v35 = vpop.f32.mrf.mxu0 }
 0x189   :  { %v435_v36 = vadd.f32 %v434_v35, %v1928_v41  ;;  %779 = vmatprep.mubr.f32.mxu1 %v498_v18  ;;  %v499_v38 = vmax.f32 %v433_v34, 0.0 }
 0x18a   :  { %780 = vmatmul.mubr.f32.gmra.mxu1 %v497_v20 }
 0x18b   :  { %v500_v37 = vmax.f32 %v435_v36, 0.0 }
 0x18d   :  { %784 = vmatprep.mubr.f32.mxu1 %v500_v37 }
 0x18e   :  { %785 = vmatmul.mubr.f32.gmra.mxu1 %v499_v38 }
 0x1d2   :  { %v631_v44 = vpop.f32.mrf.mxu0 }
 0x1d3   :  { %v896_v0 = vadd.f32 %v1997_v43, %v631_v44 }
 0x1d4   :  { %v633_v46 = vpop.f32.mrf.mxu0 }
 0x1d5   :  { %v2000_v40 = vadd.f32 %v1581_v47, %v896_v0 }
 0x1d6   :  { %v636_v49 = vpop.f32.mrf.mxu0 }
 0x1d7   :  { %v897_v41 = vadd.f32 %v1997_v43, %v636_v49  ;;  %960 = vadd.xlane.f32.xlu0 %v2000_v40 }
 0x1d8   :  { %v638_v50 = vpop.f32.mrf.mxu0 }
 0x1d9   :  { %v2004_v53 = vadd.f32 %v1582_v52, %v897_v41 }
 0x1da   :  { %v641_v55 = vpop.f32.mrf.mxu0 }
 0x1db   :  { %v898_v56 = vadd.f32 %v1997_v43, %v641_v55  ;;  %962 = vadd.xlane.f32.xlu0 %v2004_v53 }
 0x1dc   :  { %v643_v58 = vpop.f32.mrf.mxu0 }
 0x1dd   :  { %v2009_v59 = vadd.f32 %v898_v56, %v1742_v39 }
 0x1de   :  { %v646_v61 = vpop.f32.mrf.mxu0 }
 0x1df   :  { %v899_v62 = vadd.f32 %v1997_v43, %v646_v61  ;;  %964 = vadd.xlane.f32.xlu1 %v2009_v59 }
 0x1e0   :  { %v648_v1 = vpop.f32.mrf.mxu0 }
 0x1e1   :  { %v2014_v3 = vadd.f32 %v899_v62, %v1749_v42 }
 0x1e2   :  { %v651_v4 = vpop.f32.mrf.mxu1 }
 0x1e3   :  { %v900_v6 = vadd.f32 %v1997_v43, %v651_v4  ;;  %966 = vadd.xlane.f32.xlu1 %v2014_v3 }
 0x1e4   :  { %v653_v8 = vpop.f32.mrf.mxu1 }
 0x1e5   :  { %v2019_v9 = vadd.f32 %v900_v6, %v1756_v45 }
 0x1e6   :  { %v656_v39 = vpop.f32.mrf.mxu1 }
 0x1e7   :  { %v901_v11 = vadd.f32 %v1997_v43, %v656_v39  ;;  %968 = vadd.xlane.f32.xlu0 %v2019_v9 }
 0x1e8   :  { %v658_v13 = vpop.f32.mrf.mxu1 }
 0x1e9   :  { %v2024_v15 = vadd.f32 %v901_v11, %v1763_v48 }
 0x1ea   :  { %v661_v42 = vpop.f32.mrf.mxu1 }
 0x1eb   :  { %v902_v17 = vadd.f32 %v1997_v43, %v661_v42  ;;  %970 = vadd.xlane.f32.xlu1 %v2024_v15 }
 0x1ec   :  { %v663_v18 = vpop.f32.mrf.mxu1 }
 0x1ed   :  { %v2029_v20 = vadd.f32 %v902_v17, %v1770_v51 }
 0x1ee   :  { %v666_v45 = vpop.f32.mrf.mxu1 }
 0x1ef   :  { %v903_v34 = vadd.f32 %v1997_v43, %v666_v45  ;;  %972 = vadd.xlane.f32.xlu0 %v2029_v20 }
 0x1f0   :  { %v668_v35 = vpop.f32.mrf.mxu1 }
 0x1f1   :  { %v2034_v36 = vadd.f32 %v903_v34, %v1777_v54 }
 0x1f2   :  { %v671_v48 = vpop.f32.mrf.mxu1 }
 0x1f3   :  { %v904_v37 = vadd.f32 %v1997_v43, %v671_v48  ;;  %974 = vadd.xlane.f32.xlu1 %v2034_v36 }
 0x1f4   :  { %v673_v38 = vpop.f32.mrf.mxu1 }
 0x1f5   :  { %v2039_v44 = vadd.f32 %v904_v37, %v1784_v57 }
 0x1f6   :  { %v676_v51 = vpop.f32.mrf.mxu1 }
 0x1f7   :  { %v905_v0 = vadd.f32 %v1997_v43, %v676_v51  ;;  %976 = vadd.xlane.f32.xlu0 %v2039_v44 }
 0x1f8   :  { %v678_v46 = vpop.f32.mrf.mxu1 }
 0x1f9   :  { %v2044_v47 = vadd.f32 %v905_v0, %v1791_v60 }
 0x1fa   :  { %v681_v54 = vpop.f32.mrf.mxu1 }
 0x1fb   :  { %v906_v49 = vadd.f32 %v1997_v43, %v681_v54  ;;  %978 = vadd.xlane.f32.xlu1 %v2044_v47 }
 0x1fc   :  { %v683_v41 = vpop.f32.mrf.mxu1 }
 0x1fd   :  { %v2049_v50 = vadd.f32 %v906_v49, %v1798_v63 }
 0x1fe   :  { %v686_v57 = vpop.f32.mrf.mxu1 }
 0x1ff   :  { %v907_v52 = vadd.f32 %v1997_v43, %v686_v57  ;;  %980 = vadd.xlane.f32.xlu0 %v2049_v50 }
 0x200   :  { %v688_v55 = vpop.f32.mrf.mxu1 }
 0x201   :  { %v2054_v56 = vadd.f32 %v907_v52, %v1805_v2 }
 0x202   :  { %v691_v60 = vpop.f32.mrf.mxu1 }
 0x203   :  { %v908_v58 = vadd.f32 %v1997_v43, %v691_v60  ;;  %982 = vadd.xlane.f32.xlu1 %v2054_v56 }
 0x204   :  { %v693_v61 = vpop.f32.mrf.mxu1 }
 0x205   :  { %v2059_v62 = vadd.f32 %v908_v58, %v1814_v5 }
 0x206   :  { %v696_v63 = vpop.f32.mrf.mxu1 }
 0x207   :  { %v909_v1 = vadd.f32 %v1997_v43, %v696_v63  ;;  %984 = vadd.xlane.f32.xlu0 %v2059_v62 }
 0x208   :  { %v698_v4 = vpop.f32.mrf.mxu1 }
 0x209   :  { %v2064_v6 = vadd.f32 %v909_v1, %v1822_v7 }
 0x20a   :  { %v701_v2 = vpop.f32.mrf.mxu1 }
 0x20b   :  { %v910_v8 = vadd.f32 %v1997_v43, %v701_v2  ;;  %986 = vadd.xlane.f32.xlu1 %v2064_v6 }
 0x20c   :  { %v703_v39 = vpop.f32.mrf.mxu1 }
 0x20d   :  { %v2069_v11 = vadd.f32 %v910_v8, %v1829_v10 }
 0x20e   :  { %v706_v5 = vpop.f32.mrf.mxu1 }
 0x20f   :  { %v911_v13 = vadd.f32 %v1997_v43, %v706_v5  ;;  %988 = vadd.xlane.f32.xlu0 %v2069_v11 }
 0x210   :  { %v708_v42 = vpop.f32.mrf.mxu1 }
 0x211   :  { %v2074_v17 = vadd.f32 %v911_v13, %v1836_v12 }
 0x212   :  { %v711_v7 = vpop.f32.mrf.mxu1 }
 0x213   :  { %v912_v18 = vadd.f32 %v1997_v43, %v711_v7  ;;  %990 = vadd.xlane.f32.xlu1 %v2074_v17 }
 0x214   :  { %v713_v45 = vpop.f32.mrf.mxu1 }
 0x215   :  { %v2079_v34 = vadd.f32 %v912_v18, %v1843_v14 }
 0x216   :  { %v716_v10 = vpop.f32.mrf.mxu1 }
 0x217   :  { %v913_v35 = vadd.f32 %v1997_v43, %v716_v10  ;;  %992 = vadd.xlane.f32.xlu0 %v2079_v34 }
 0x218   :  { %v718_v48 = vpop.f32.mrf.mxu1 }
 0x219   :  { %v2084_v37 = vadd.f32 %v913_v35, %v1850_v16 }
 0x21a   :  { %v721_v12 = vpop.f32.mrf.mxu1 }
 0x21b   :  { %v914_v38 = vadd.f32 %v1997_v43, %v721_v12  ;;  %994 = vadd.xlane.f32.xlu1 %v2084_v37 }
 0x21c   :  { %v723_v51 = vpop.f32.mrf.mxu1 }
 0x21d   :  { %v2089_v0 = vadd.f32 %v914_v38, %v1857_v19 }
 0x21e   :  { %v726_v14 = vpop.f32.mrf.mxu1 }
 0x21f   :  { %v915_v46 = vadd.f32 %v1997_v43, %v726_v14  ;;  %996 = vadd.xlane.f32.xlu0 %v2089_v0 }
 0x220   :  { %v728_v54 = vpop.f32.mrf.mxu1 }
 0x221   :  { %v2094_v49 = vadd.f32 %v915_v46, %v1865_v21 }
 0x222   :  { %v731_v16 = vpop.f32.mrf.mxu1 }
 0x223   :  { %v916_v41 = vadd.f32 %v1997_v43, %v731_v16  ;;  %998 = vadd.xlane.f32.xlu1 %v2094_v49 }
 0x224   :  { %v733_v57 = vpop.f32.mrf.mxu1 }
 0x225   :  { %v2099_v52 = vadd.f32 %v916_v41, %v1870_v22 }
 0x226   :  { %v736_v19 = vpop.f32.mrf.mxu1 }
 0x227   :  { %v917_v55 = vadd.f32 %v1997_v43, %v736_v19  ;;  %1000 = vadd.xlane.f32.xlu0 %v2099_v52 }
 0x228   :  { %v738_v60 = vpop.f32.mrf.mxu1 }
 0x229   :  { %v2104_v58 = vadd.f32 %v917_v55, %v1876_v23 }
 0x22a   :  { %v741_v21 = vpop.f32.mrf.mxu1 }
 0x22b   :  { %v918_v61 = vadd.f32 %v1997_v43, %v741_v21  ;;  %1002 = vadd.xlane.f32.xlu1 %v2104_v58 }
 0x22c   :  { %v743_v63 = vpop.f32.mrf.mxu1 }
 0x22d   :  { %v2109_v1 = vadd.f32 %v918_v61, %v1882_v24 }
 0x22e   :  { %v746_v22 = vpop.f32.mrf.mxu1 }
 0x22f   :  { %v919_v4 = vadd.f32 %v1997_v43, %v746_v22  ;;  %1004 = vadd.xlane.f32.xlu0 %v2109_v1 }
 0x230   :  { %v748_v2 = vpop.f32.mrf.mxu1 }
 0x231   :  { %v2114_v8 = vadd.f32 %v919_v4, %v1888_v25 }
 0x232   :  { %v751_v23 = vpop.f32.mrf.mxu1 }
 0x233   :  { %v920_v39 = vadd.f32 %v1997_v43, %v751_v23  ;;  %1006 = vadd.xlane.f32.xlu1 %v2114_v8 }
 0x234   :  { %v753_v5 = vpop.f32.mrf.mxu1 }
 0x235   :  { %v2119_v13 = vadd.f32 %v920_v39, %v1892_v26 }
 0x236   :  { %v756_v24 = vpop.f32.mrf.mxu1 }
 0x237   :  { %v921_v42 = vadd.f32 %v1997_v43, %v756_v24  ;;  %1008 = vadd.xlane.f32.xlu0 %v2119_v13 }
 0x238   :  { %v758_v7 = vpop.f32.mrf.mxu1 }
 0x239   :  { %v2124_v18 = vadd.f32 %v921_v42, %v1896_v27 }
 0x23a   :  { %v761_v25 = vpop.f32.mrf.mxu1 }
 0x23b   :  { %v922_v45 = vadd.f32 %v1997_v43, %v761_v25  ;;  %1010 = vadd.xlane.f32.xlu1 %v2124_v18 }
 0x23c   :  { %v763_v10 = vpop.f32.mrf.mxu1 }
 0x23d   :  { %v2129_v35 = vadd.f32 %v922_v45, %v1900_v28 }
 0x23e   :  { %v766_v26 = vpop.f32.mrf.mxu1 }
 0x23f   :  { %v923_v48 = vadd.f32 %v1997_v43, %v766_v26  ;;  %1012 = vadd.xlane.f32.xlu0 %v2129_v35 }
 0x240   :  { %v768_v12 = vpop.f32.mrf.mxu1 }
 0x241   :  { %v2134_v38 = vadd.f32 %v923_v48, %v1904_v29 }
 0x242   :  { %v771_v27 = vpop.f32.mrf.mxu1 }
 0x243   :  { %v924_v51 = vadd.f32 %v1997_v43, %v771_v27  ;;  %1014 = vadd.xlane.f32.xlu1 %v2134_v38 }
 0x244   :  { %v773_v14 = vpop.f32.mrf.mxu1 }
 0x245   :  { %v2139_v46 = vadd.f32 %v924_v51, %v1908_v30 }
 0x246   :  { %v776_v28 = vpop.f32.mrf.mxu1 }
 0x247   :  { %v925_v54 = vadd.f32 %v1997_v43, %v776_v28  ;;  %1016 = vadd.xlane.f32.xlu0 %v2139_v46 }
 0x248   :  { %v778_v16 = vpop.f32.mrf.mxu1 }
 0x249   :  { %v2144_v41 = vadd.f32 %v925_v54, %v1912_v31 }
 0x24a   :  { %v781_v29 = vpop.f32.mrf.mxu1 }
 0x24b   :  { %v926_v57 = vadd.f32 %v1997_v43, %v781_v29  ;;  %1018 = vadd.xlane.f32.xlu1 %v2144_v41 }
 0x24c   :  { %v783_v19 = vpop.f32.mrf.mxu1 }
 0x24d   :  { %v2149_v55 = vadd.f32 %v926_v57, %v1916_v32 }
 0x24e   :  { %v786_v30 = vpop.f32.mrf.mxu1 }
 0x24f   :  { %v927_v60 = vadd.f32 %v1997_v43, %v786_v30  ;;  %1020 = vadd.xlane.f32.xlu0 %v2149_v55 }
 0x250   :  { %v788_v21 = vpop.f32.mrf.mxu1 }
 0x251   :  { %v2154_v61 = vadd.f32 %v927_v60, %v1920_v33 }
 0x253   :  { %1022 = vadd.xlane.f32.xlu1 %v2154_v61 }
 0x260   :  { %v961_v31 = vpop.xlane.xlu0 %960 }
 0x261   :  { %v1025_v63 = vmul.f32 0.0078125, %v961_v31 }
 0x263   :  { %v2158_v22 = vsub.f32 %v2000_v40, %v1025_v63 }
 0x264   :  { %v963_v4 = vpop.xlane.xlu0 %962 }
 0x265   :  { %v1026_v2 = vmul.f32 0.0078125, %v963_v4  ;;  %v1089_v32 = vmul.f32 %v2158_v22, %v2158_v22 }
 0x267   :  { %v2163_v43 = vsub.f32 %v2004_v53, %v1026_v2  ;;  %1121 = vadd.xlane.f32.xlu0 %v1089_v32 }
 0x268   :  { %v965_v23 = vpop.xlane.xlu1 %964 }
 0x269   :  { %v1027_v39 = vmul.f32 0.0078125, %v965_v23  ;;  %v1090_v33 = vmul.f32 %v2163_v43, %v2163_v43 }
 0x26b   :  { %v2168_v5 = vsub.f32 %v2009_v59, %v1027_v39  ;;  %1123 = vadd.xlane.f32.xlu1 %v1090_v33 }
 0x26c   :  { %v967_v40 = vpop.xlane.xlu1 %966 }
 0x26d   :  { %v1028_v24 = vmul.f32 0.0078125, %v967_v40  ;;  %v1091_v42 = vmul.f32 %v2168_v5, %v2168_v5 }
 0x26f   :  { %v2173_v7 = vsub.f32 %v2014_v3, %v1028_v24  ;;  %1125 = vadd.xlane.f32.xlu0 %v1091_v42 }
 0x270   :  { %v969_v53 = vpop.xlane.xlu0 %968 }
 0x271   :  { %v1029_v25 = vmul.f32 0.0078125, %v969_v53  ;;  %v1092_v45 = vmul.f32 %v2173_v7, %v2173_v7 }
 0x273   :  { %v2178_v10 = vsub.f32 %v2019_v9, %v1029_v25  ;;  %1127 = vadd.xlane.f32.xlu1 %v1092_v45 }
 0x274   :  { %v971_v59 = vpop.xlane.xlu1 %970 }
 0x275   :  { %v1030_v26 = vmul.f32 0.0078125, %v971_v59  ;;  %v1093_v48 = vmul.f32 %v2178_v10, %v2178_v10 }
 0x277   :  { %v2183_v12 = vsub.f32 %v2024_v15, %v1030_v26  ;;  %1129 = vadd.xlane.f32.xlu0 %v1093_v48 }
 0x278   :  { %v973_v3 = vpop.xlane.xlu0 %972 }
 0x279   :  { %v1031_v27 = vmul.f32 0.0078125, %v973_v3  ;;  %v1094_v51 = vmul.f32 %v2183_v12, %v2183_v12 }
 0x27b   :  { %v2188_v14 = vsub.f32 %v2029_v20, %v1031_v27  ;;  %1131 = vadd.xlane.f32.xlu1 %v1094_v51 }
 0x27c   :  { %v975_v9 = vpop.xlane.xlu1 %974 }
 0x27d   :  { %v1032_v28 = vmul.f32 0.0078125, %v975_v9  ;;  %v1095_v54 = vmul.f32 %v2188_v14, %v2188_v14 }
 0x27f   :  { %v2193_v16 = vsub.f32 %v2034_v36, %v1032_v28  ;;  %1133 = vadd.xlane.f32.xlu0 %v1095_v54 }
 0x280   :  { %v977_v15 = vpop.xlane.xlu0 %976 }
 0x281   :  { %v1033_v29 = vmul.f32 0.0078125, %v977_v15  ;;  %v1096_v57 = vmul.f32 %v2193_v16, %v2193_v16 }
 0x283   :  { %v2198_v19 = vsub.f32 %v2039_v44, %v1033_v29  ;;  %1135 = vadd.xlane.f32.xlu1 %v1096_v57 }
 0x284   :  { %v979_v20 = vpop.xlane.xlu1 %978 }
 0x285   :  { %v1034_v30 = vmul.f32 0.0078125, %v979_v20  ;;  %v1097_v60 = vmul.f32 %v2198_v19, %v2198_v19 }
 0x287   :  { %v2203_v21 = vsub.f32 %v2044_v47, %v1034_v30  ;;  %1137 = vadd.xlane.f32.xlu0 %v1097_v60 }
 0x288   :  { %v981_v36 = vpop.xlane.xlu0 %980 }
 0x289   :  { %v1035_v31 = vmul.f32 0.0078125, %v981_v36  ;;  %v1098_v63 = vmul.f32 %v2203_v21, %v2203_v21 }
 0x28b   :  { %v2208_v4 = vsub.f32 %v2049_v50, %v1035_v31  ;;  %1139 = vadd.xlane.f32.xlu1 %v1098_v63 }
 0x28c   :  { %v983_v44 = vpop.xlane.xlu1 %982 }
 0x28d   :  { %v1036_v2 = vmul.f32 0.0078125, %v983_v44  ;;  %v1099_v32 = vmul.f32 %v2208_v4, %v2208_v4 }
 0x28f   :  { %v2213_v23 = vsub.f32 %v2054_v56, %v1036_v2  ;;  %1141 = vadd.xlane.f32.xlu0 %v1099_v32 }
 0x290   :  { %v985_v47 = vpop.xlane.xlu0 %984 }
 0x291   :  { %v1037_v39 = vmul.f32 0.0078125, %v985_v47  ;;  %v1100_v33 = vmul.f32 %v2213_v23, %v2213_v23 }
 0x293   :  { %v2218_v40 = vsub.f32 %v2059_v62, %v1037_v39  ;;  %1143 = vadd.xlane.f32.xlu1 %v1100_v33 }
 0x294   :  { %v987_v50 = vpop.xlane.xlu1 %986 }
 0x295   :  { %v1038_v24 = vmul.f32 0.0078125, %v987_v50  ;;  %v1101_v42 = vmul.f32 %v2218_v40, %v2218_v40 }
 0x297   :  { %v2223_v53 = vsub.f32 %v2064_v6, %v1038_v24  ;;  %1145 = vadd.xlane.f32.xlu0 %v1101_v42 }
 0x298   :  { %v989_v56 = vpop.xlane.xlu0 %988 }
 0x299   :  { %v1039_v25 = vmul.f32 0.0078125, %v989_v56  ;;  %v1102_v45 = vmul.f32 %v2223_v53, %v2223_v53 }
 0x29b   :  { %v2228_v59 = vsub.f32 %v2069_v11, %v1039_v25  ;;  %1147 = vadd.xlane.f32.xlu1 %v1102_v45 }
 0x29c   :  { %v991_v62 = vpop.xlane.xlu1 %990 }
 0x29d   :  { %v1040_v26 = vmul.f32 0.0078125, %v991_v62  ;;  %v1103_v48 = vmul.f32 %v2228_v59, %v2228_v59 }
 0x29f   :  { %v2233_v3 = vsub.f32 %v2074_v17, %v1040_v26  ;;  %1149 = vadd.xlane.f32.xlu0 %v1103_v48 }
 0x2a0   :  { %v993_v6 = vpop.xlane.xlu0 %992 }
 0x2a1   :  { %v1041_v27 = vmul.f32 0.0078125, %v993_v6  ;;  %v1104_v51 = vmul.f32 %v2233_v3, %v2233_v3 }
 0x2a3   :  { %v2238_v9 = vsub.f32 %v2079_v34, %v1041_v27  ;;  %1151 = vadd.xlane.f32.xlu1 %v1104_v51 }
 0x2a4   :  { %v995_v11 = vpop.xlane.xlu1 %994 }
 0x2a5   :  { %v1042_v28 = vmul.f32 0.0078125, %v995_v11  ;;  %v1105_v54 = vmul.f32 %v2238_v9, %v2238_v9 }
 0x2a7   :  { %v2243_v15 = vsub.f32 %v2084_v37, %v1042_v28  ;;  %1153 = vadd.xlane.f32.xlu0 %v1105_v54 }
 0x2a8   :  { %v997_v17 = vpop.xlane.xlu0 %996 }
 0x2a9   :  { %v1043_v29 = vmul.f32 0.0078125, %v997_v17  ;;  %v1106_v57 = vmul.f32 %v2243_v15, %v2243_v15 }
 0x2ab   :  { %v2248_v20 = vsub.f32 %v2089_v0, %v1043_v29  ;;  %1155 = vadd.xlane.f32.xlu1 %v1106_v57 }
 0x2ac   :  { %v999_v34 = vpop.xlane.xlu1 %998 }
 0x2ad   :  { %v1044_v30 = vmul.f32 0.0078125, %v999_v34  ;;  %v1107_v60 = vmul.f32 %v2248_v20, %v2248_v20 }
 0x2af   :  { %v2253_v36 = vsub.f32 %v2094_v49, %v1044_v30  ;;  %1157 = vadd.xlane.f32.xlu0 %v1107_v60 }
 0x2b0   :  { %v1001_v37 = vpop.xlane.xlu0 %1000 }
 0x2b1   :  { %v1045_v31 = vmul.f32 0.0078125, %v1001_v37  ;;  %v1108_v63 = vmul.f32 %v2253_v36, %v2253_v36 }
 0x2b3   :  { %v2258_v44 = vsub.f32 %v2099_v52, %v1045_v31  ;;  %1159 = vadd.xlane.f32.xlu1 %v1108_v63 }
 0x2b4   :  { %v1003_v0 = vpop.xlane.xlu1 %1002 }
 0x2b5   :  { %v1046_v2 = vmul.f32 0.0078125, %v1003_v0  ;;  %v1109_v32 = vmul.f32 %v2258_v44, %v2258_v44 }
 0x2b7   :  { %v2263_v47 = vsub.f32 %v2104_v58, %v1046_v2  ;;  %1161 = vadd.xlane.f32.xlu0 %v1109_v32 }
 0x2b8   :  { %v1005_v49 = vpop.xlane.xlu0 %1004 }
 0x2b9   :  { %v1047_v39 = vmul.f32 0.0078125, %v1005_v49  ;;  %v1110_v33 = vmul.f32 %v2263_v47, %v2263_v47 }
 0x2bb   :  { %v2268_v50 = vsub.f32 %v2109_v1, %v1047_v39  ;;  %1163 = vadd.xlane.f32.xlu1 %v1110_v33 }
 0x2bc   :  { %v1007_v52 = vpop.xlane.xlu1 %1006 }
 0x2bd   :  { %v1048_v24 = vmul.f32 0.0078125, %v1007_v52  ;;  %v1111_v42 = vmul.f32 %v2268_v50, %v2268_v50 }
 0x2bf   :  { %v2273_v56 = vsub.f32 %v2114_v8, %v1048_v24  ;;  %1165 = vadd.xlane.f32.xlu0 %v1111_v42 }
 0x2c0   :  { %v1009_v58 = vpop.xlane.xlu0 %1008 }
 0x2c1   :  { %v1049_v25 = vmul.f32 0.0078125, %v1009_v58  ;;  %v1112_v45 = vmul.f32 %v2273_v56, %v2273_v56 }
 0x2c3   :  { %v2278_v62 = vsub.f32 %v2119_v13, %v1049_v25  ;;  %1167 = vadd.xlane.f32.xlu1 %v1112_v45 }
 0x2c4   :  { %v1011_v1 = vpop.xlane.xlu1 %1010 }
 0x2c5   :  { %v1050_v26 = vmul.f32 0.0078125, %v1011_v1  ;;  %v1113_v48 = vmul.f32 %v2278_v62, %v2278_v62 }
 0x2c7   :  { %v2283_v6 = vsub.f32 %v2124_v18, %v1050_v26  ;;  %1169 = vadd.xlane.f32.xlu0 %v1113_v48 }
 0x2c8   :  { %v1013_v8 = vpop.xlane.xlu0 %1012 }
 0x2c9   :  { %v1051_v27 = vmul.f32 0.0078125, %v1013_v8  ;;  %v1114_v51 = vmul.f32 %v2283_v6, %v2283_v6 }
 0x2cb   :  { %v2288_v11 = vsub.f32 %v2129_v35, %v1051_v27  ;;  %1171 = vadd.xlane.f32.xlu1 %v1114_v51  ;;  %v2320_v51 = vld [vmem:[%s2434_s5] ss:$0 sm:$0xff]  ;;  %s1677_s5 = smov [#allocation9]  }
 0x2cc   :  { %v1015_v13 = vpop.xlane.xlu1 %1014 }
 0x2cd   :  { %v1052_v28 = vmul.f32 0.0078125, %v1015_v13  ;;  %v1115_v54 = vmul.f32 %v2288_v11, %v2288_v11 }
 0x2cf   :  { %v2293_v17 = vsub.f32 %v2134_v38, %v1052_v28  ;;  %1173 = vadd.xlane.f32.xlu0 %v1115_v54  ;;  %v2326_v54 = vld [vmem:[%s2435_s6] ss:$0 sm:$0xff]  ;;  %s1428_s6 = sshll.u32 %s1677_s5, 4  ;;  %s1429_s6 = int_to_ptr.vmem [resolvable:$true] %s1428_s6 }
 0x2d0   :  { %v1017_v18 = vpop.xlane.xlu0 %1016  ;;  %s1643_s23 = scalar_lea.vmem %s1429_s6, 4096  ;;  %p1648_p2 = scmp.lt.s32.totalorder %s1429_s6, %s1429_s6 }
 0x2d1   :  { %v1053_v29 = vmul.f32 0.0078125, %v1017_v18  ;;  %v1116_v57 = vmul.f32 %v2293_v17, %v2293_v17  ;;  %p1644_p1 = scmp.ne.s32.totalorder %s1429_s6, %s1643_s23  ;;  %p1649_p3 = scmp.lt.s32.totalorder %s1643_s23, %s1643_s23 }
 0x2d3   :  { %v2298_v34 = vsub.f32 %v2139_v46, %v1053_v29  ;;  %1175 = vadd.xlane.f32.xlu1 %v1116_v57  ;;  %p1650_p4 = por %p1649_p3, %p1648_p2 }
 0x2d4   :  { %v1019_v35 = vpop.xlane.xlu1 %1018 }
 0x2d5   :  { %v1054_v30 = vmul.f32 0.0078125, %v1019_v35  ;;  %v1117_v60 = vmul.f32 %v2298_v34, %v2298_v34  ;;  %p1651_p5 = pnand %p1650_p4, %p1644_p1 }
 0x2d7   :  { %v2303_v37 = vsub.f32 %v2144_v41, %v1054_v30  ;;  %1177 = vadd.xlane.f32.xlu0 %v1117_v60 }
 0x2d8   :  { %v1021_v38 = vpop.xlane.xlu0 %1020 }
 0x2d9   :  { %v1055_v31 = vmul.f32 0.0078125, %v1021_v38  ;;  %v1118_v63 = vmul.f32 %v2303_v37, %v2303_v37 }
 0x2db   :  { %v2308_v0 = vsub.f32 %v2149_v55, %v1055_v31  ;;  %1179 = vadd.xlane.f32.xlu1 %v1118_v63 }
 0x2dc   :  { %v1023_v46 = vpop.xlane.xlu1 %1022 }
 0x2dd   :  { %v1056_v2 = vmul.f32 0.0078125, %v1023_v46  ;;  %v1119_v32 = vmul.f32 %v2308_v0, %v2308_v0 }
 0x2df   :  { %v2313_v49 = vsub.f32 %v2154_v61, %v1056_v2  ;;  %1181 = vadd.xlane.f32.xlu0 %v1119_v32 }
 0x2e1   :  { %v1120_v41 = vmul.f32 %v2313_v49, %v2313_v49 }
 0x2e3   :  { %1183 = vadd.xlane.f32.xlu1 %v1120_v41 }
 0x2f0   :  { %v1122_v39 = vpop.xlane.xlu0 %1121 }
 0x2f1   :  { %v1185_v33 = vmul.f32 0.0078125, %v1122_v39 }
 0x2f3   :  { %v1217_v52 = vadd.f32 1e-06, %v1185_v33 }
 0x2f4   :  { %v1124_v24 = vpop.xlane.xlu1 %1123 }
 0x2f5   :  { %1517 = vrsqrt.f32 %v1217_v52  ;;  %v1186_v55 = vmul.f32 0.0078125, %v1124_v24 }
 0x2f7   :  { %v1218_v42 = vadd.f32 1e-06, %v1186_v55 }
 0x2f8   :  { %v1126_v58 = vpop.xlane.xlu0 %1125 }
 0x2f9   :  { %1519 = vrsqrt.f32 %v1218_v42  ;;  %v1187_v25 = vmul.f32 0.0078125, %v1126_v58 }
 0x2fb   :  { %v1219_v45 = vadd.f32 1e-06, %v1187_v25 }
 0x2fc   :  { %v1128_v1 = vpop.xlane.xlu1 %1127 }
 0x2fd   :  { %1521 = vrsqrt.f32 %v1219_v45  ;;  %v1188_v61 = vmul.f32 0.0078125, %v1128_v1 }
 0x2ff   :  { %v1220_v26 = vadd.f32 1e-06, %v1188_v61 }
 0x300   :  { %v1130_v48 = vpop.xlane.xlu0 %1129 }
 0x301   :  { %1523 = vrsqrt.f32 %v1220_v26  ;;  %v1189_v8 = vmul.f32 0.0078125, %v1130_v48 }
 0x302   :  { %v1518_v27 = vpop.eup %1517 }
 0x303   :  { %v1281_v13 = vmul.f32 %v1518_v27, %v2158_v22  ;;  %v1221_v28 = vadd.f32 1e-06, %v1189_v8 }
 0x304   :  { %v1132_v18 = vpop.xlane.xlu1 %1131 }
 0x305   :  { %v1320_v29 = vmul.f32 %v2320_v51, %v1281_v13  ;;  %1525 = vrsqrt.f32 %v1221_v28  ;;  %v1190_v57 = vmul.f32 0.0078125, %v1132_v18 }
 0x306   :  { %v1520_v35 = vpop.eup %1519 }
 0x307   :  { %v1359_v30 = vadd.f32 %v2326_v54, %v1320_v29  ;;  %v1282_v60 = vmul.f32 %v1520_v35, %v2163_v43  ;;  %v1222_v38 = vadd.f32 1e-06, %v1190_v57 }
 0x308   :  { %v1134_v31 = vpop.xlane.xlu0 %1133 }
 0x309   :  { %1391 = vst [vmem:[#allocation9] sm:$0xff] %v1359_v30  ;;  %v1321_v22 = vmul.f32 %v2320_v51, %v1282_v60  ;;  %1527 = vrsqrt.f32 %v1222_v38  ;;  %v1191_v63 = vmul.f32 0.0078125, %v1134_v31 }
 0x30a   :  { %v1522_v46 = vpop.eup %1521 }
 0x30b   :  { %v1360_v2 = vadd.f32 %v2326_v54, %v1321_v22  ;;  %v1283_v32 = vmul.f32 %v1522_v46, %v2168_v5  ;;  %v1223_v41 = vadd.f32 1e-06, %v1191_v63 }
 0x30c   :  { %v1136_v39 = vpop.xlane.xlu1 %1135 }
 0x30d   :  { %1392 = vst [vmem:[#allocation9 + $0x8] sm:$0xff] %v1360_v2  ;;  %v1322_v33 = vmul.f32 %v2320_v51, %v1283_v32  ;;  %1529 = vrsqrt.f32 %v1223_v41  ;;  %v1192_v52 = vmul.f32 0.0078125, %v1136_v39 }
 0x30e   :  { %v1524_v43 = vpop.eup %1523 }
 0x30f   :  { %v1361_v24 = vadd.f32 %v2326_v54, %v1322_v33  ;;  %v1284_v55 = vmul.f32 %v1524_v43, %v2173_v7  ;;  %v1224_v42 = vadd.f32 1e-06, %v1192_v52 }
 0x310   :  { %v1138_v58 = vpop.xlane.xlu0 %1137 }
 0x311   :  { %1393 = vst [vmem:[#allocation9 + $0x10] sm:$0xff] %v1361_v24  ;;  %v1323_v25 = vmul.f32 %v2320_v51, %v1284_v55  ;;  %1531 = vrsqrt.f32 %v1224_v42  ;;  %v1193_v45 = vmul.f32 0.0078125, %v1138_v58 }
 0x312   :  { %v1526_v5 = vpop.eup %1525 }
 0x313   :  { %v1362_v1 = vadd.f32 %v2326_v54, %v1323_v25  ;;  %v1285_v61 = vmul.f32 %v1526_v5, %v2178_v10  ;;  %v1225_v26 = vadd.f32 1e-06, %v1193_v45 }
 0x314   :  { %v1140_v48 = vpop.xlane.xlu1 %1139 }
 0x315   :  { %1394 = vst [vmem:[#allocation9 + $0x18] sm:$0xff] %v1362_v1  ;;  %v1324_v8 = vmul.f32 %v2320_v51, %v1285_v61  ;;  %1533 = vrsqrt.f32 %v1225_v26  ;;  %v1194_v27 = vmul.f32 0.0078125, %v1140_v48 }
 0x316   :  { %v1528_v7 = vpop.eup %1527 }
 0x317   :  { %v1363_v13 = vadd.f32 %v2326_v54, %v1324_v8  ;;  %v1286_v28 = vmul.f32 %v1528_v7, %v2183_v12  ;;  %v1226_v18 = vadd.f32 1e-06, %v1194_v27 }
 0x318   :  { %v1142_v29 = vpop.xlane.xlu0 %1141 }
 0x319   :  { %1395 = vst [vmem:[#allocation9 + $0x20] sm:$0xff] %v1363_v13  ;;  %v1325_v57 = vmul.f32 %v2320_v51, %v1286_v28  ;;  %1535 = vrsqrt.f32 %v1226_v18  ;;  %v1195_v35 = vmul.f32 0.0078125, %v1142_v29 }
 0x31a   :  { %v1530_v10 = vpop.eup %1529 }
 0x31b   :  { %v1364_v30 = vadd.f32 %v2326_v54, %v1325_v57  ;;  %v1287_v60 = vmul.f32 %v1530_v10, %v2188_v14  ;;  %v1227_v38 = vadd.f32 1e-06, %v1195_v35 }
 0x31c   :  { %v1144_v31 = vpop.xlane.xlu1 %1143 }
 0x31d   :  { %1396 = vst [vmem:[#allocation9 + $0x28] sm:$0xff] %v1364_v30  ;;  %v1326_v22 = vmul.f32 %v2320_v51, %v1287_v60  ;;  %1537 = vrsqrt.f32 %v1227_v38  ;;  %v1196_v63 = vmul.f32 0.0078125, %v1144_v31 }
 0x31e   :  { %v1532_v12 = vpop.eup %1531 }
 0x31f   :  { %v1365_v46 = vadd.f32 %v2326_v54, %v1326_v22  ;;  %v1288_v2 = vmul.f32 %v1532_v12, %v2193_v16  ;;  %v1228_v32 = vadd.f32 1e-06, %v1196_v63 }
 0x320   :  { %v1146_v41 = vpop.xlane.xlu0 %1145 }
 0x321   :  { %1397 = vst [vmem:[#allocation9 + $0x30] sm:$0xff] %v1365_v46  ;;  %v1327_v39 = vmul.f32 %v2320_v51, %v1288_v2  ;;  %1539 = vrsqrt.f32 %v1228_v32  ;;  %v1197_v33 = vmul.f32 0.0078125, %v1146_v41 }
 0x322   :  { %v1534_v14 = vpop.eup %1533 }
 0x323   :  { %v1366_v52 = vadd.f32 %v2326_v54, %v1327_v39  ;;  %v1289_v43 = vmul.f32 %v1534_v14, %v2198_v19  ;;  %v1229_v24 = vadd.f32 1e-06, %v1197_v33 }
 0x324   :  { %v1148_v55 = vpop.xlane.xlu1 %1147 }
 0x325   :  { %1398 = vst [vmem:[#allocation9 + $0x38] sm:$0xff] %v1366_v52  ;;  %v1328_v42 = vmul.f32 %v2320_v51, %v1289_v43  ;;  %1541 = vrsqrt.f32 %v1229_v24  ;;  %v1198_v58 = vmul.f32 0.0078125, %v1148_v55 }
 0x326   :  { %v1536_v16 = vpop.eup %1535 }
 0x327   :  { %v1367_v25 = vadd.f32 %v2326_v54, %v1328_v42  ;;  %v1290_v45 = vmul.f32 %v1536_v16, %v2203_v21  ;;  %v1230_v5 = vadd.f32 1e-06, %v1198_v58 }
 0x328   :  { %v1150_v1 = vpop.xlane.xlu0 %1149 }
 0x329   :  { %1399 = vst [vmem:[#allocation9 + $0x40] sm:$0xff] %v1367_v25  ;;  %v1329_v61 = vmul.f32 %v2320_v51, %v1290_v45  ;;  %1543 = vrsqrt.f32 %v1230_v5  ;;  %v1199_v26 = vmul.f32 0.0078125, %v1150_v1 }
 0x32a   :  { %v1538_v19 = vpop.eup %1537 }
 0x32b   :  { %v1368_v48 = vadd.f32 %v2326_v54, %v1329_v61  ;;  %v1291_v8 = vmul.f32 %v1538_v19, %v2208_v4  ;;  %v1231_v27 = vadd.f32 1e-06, %v1199_v26 }
 0x32c   :  { %v1152_v7 = vpop.xlane.xlu1 %1151 }
 0x32d   :  { %1400 = vst [vmem:[#allocation9 + $0x48] sm:$0xff] %v1368_v48  ;;  %v1330_v13 = vmul.f32 %v2320_v51, %v1291_v8  ;;  %1545 = vrsqrt.f32 %v1231_v27  ;;  %v1200_v28 = vmul.f32 0.0078125, %v1152_v7 }
 0x32e   :  { %v1540_v21 = vpop.eup %1539 }
 0x32f   :  { %v1369_v18 = vadd.f32 %v2326_v54, %v1330_v13  ;;  %v1292_v29 = vmul.f32 %v1540_v21, %v2213_v23  ;;  %v1232_v57 = vadd.f32 1e-06, %v1200_v28 }
 0x330   :  { %v1154_v35 = vpop.xlane.xlu0 %1153 }
 0x331   :  { %1401 = vst [vmem:[#allocation9 + $0x50] sm:$0xff] %v1369_v18  ;;  %v1331_v10 = vmul.f32 %v2320_v51, %v1292_v29  ;;  %1547 = vrsqrt.f32 %v1232_v57  ;;  %v1201_v30 = vmul.f32 0.0078125, %v1154_v35 }
 0x332   :  { %v1542_v4 = vpop.eup %1541 }
 0x333   :  { %v1370_v60 = vadd.f32 %v2326_v54, %v1331_v10  ;;  %v1293_v38 = vmul.f32 %v1542_v4, %v2218_v40  ;;  %v1233_v31 = vadd.f32 1e-06, %v1201_v30 }
 0x334   :  { %v1156_v22 = vpop.xlane.xlu1 %1155 }
 0x335   :  { %1402 = vst [vmem:[#allocation9 + $0x58] sm:$0xff] %v1370_v60  ;;  %v1332_v63 = vmul.f32 %v2320_v51, %v1293_v38  ;;  %1549 = vrsqrt.f32 %v1233_v31  ;;  %v1202_v12 = vmul.f32 0.0078125, %v1156_v22 }
 0x336   :  { %v1544_v23 = vpop.eup %1543 }
 0x337   :  { %v1371_v46 = vadd.f32 %v2326_v54, %v1332_v63  ;;  %v1294_v2 = vmul.f32 %v1544_v23, %v2223_v53  ;;  %v1234_v32 = vadd.f32 1e-06, %v1202_v12 }
 0x338   :  { %v1158_v41 = vpop.xlane.xlu0 %1157 }
 0x339   :  { %1403 = vst [vmem:[#allocation9 + $0x60] sm:$0xff] %v1371_v46  ;;  %v1333_v39 = vmul.f32 %v2320_v51, %v1294_v2  ;;  %1551 = vrsqrt.f32 %v1234_v32  ;;  %v1203_v33 = vmul.f32 0.0078125, %v1158_v41 }
 0x33a   :  { %v1546_v40 = vpop.eup %1545 }
 0x33b   :  { %v1372_v14 = vadd.f32 %v2326_v54, %v1333_v39  ;;  %v1295_v52 = vmul.f32 %v1546_v40, %v2228_v59  ;;  %v1235_v43 = vadd.f32 1e-06, %v1203_v33 }
 0x33c   :  { %v1160_v24 = vpop.xlane.xlu1 %1159 }
 0x33d   :  { %1404 = vst [vmem:[#allocation9 + $0x68] sm:$0xff] %v1372_v14  ;;  %v1334_v55 = vmul.f32 %v2320_v51, %v1295_v52  ;;  %1553 = vrsqrt.f32 %v1235_v43  ;;  %v1204_v42 = vmul.f32 0.0078125, %v1160_v24 }
 0x33e   :  { %v1548_v53 = vpop.eup %1547 }
 0x33f   :  { %v1373_v58 = vadd.f32 %v2326_v54, %v1334_v55  ;;  %v1296_v16 = vmul.f32 %v1548_v53, %v2233_v3  ;;  %v1236_v25 = vadd.f32 1e-06, %v1204_v42 }
 0x340   :  { %v1162_v45 = vpop.xlane.xlu0 %1161 }
 0x341   :  { %1405 = vst [vmem:[#allocation9 + $0x70] sm:$0xff] %v1373_v58  ;;  %v1335_v5 = vmul.f32 %v2320_v51, %v1296_v16  ;;  %1555 = vrsqrt.f32 %v1236_v25  ;;  %v1205_v1 = vmul.f32 0.0078125, %v1162_v45 }
 0x342   :  { %v1550_v59 = vpop.eup %1549 }
 0x343   :  { %v1374_v61 = vadd.f32 %v2326_v54, %v1335_v5  ;;  %v1297_v26 = vmul.f32 %v1550_v59, %v2238_v9  ;;  %v1237_v19 = vadd.f32 1e-06, %v1205_v1 }
 0x344   :  { %v1164_v48 = vpop.xlane.xlu1 %1163 }
 0x345   :  { %1406 = vst [vmem:[#allocation9 + $0x78] sm:$0xff] %v1374_v61  ;;  %v1336_v8 = vmul.f32 %v2320_v51, %v1297_v26  ;;  %1557 = vrsqrt.f32 %v1237_v19  ;;  %v1206_v27 = vmul.f32 0.0078125, %v1164_v48 }
 0x346   :  { %v1552_v3 = vpop.eup %1551 }
 0x347   :  { %v1375_v7 = vadd.f32 %v2326_v54, %v1336_v8  ;;  %v1298_v13 = vmul.f32 %v1552_v3, %v2243_v15  ;;  %v1238_v28 = vadd.f32 1e-06, %v1206_v27 }
 0x348   :  { %v1166_v21 = vpop.xlane.xlu0 %1165 }
 0x349   :  { %1407 = vst [vmem:[#allocation9 + $0x80] sm:$0xff] %v1375_v7  ;;  %v1337_v18 = vmul.f32 %v2320_v51, %v1298_v13  ;;  %1559 = vrsqrt.f32 %v1238_v28  ;;  %v1207_v29 = vmul.f32 0.0078125, %v1166_v21 }
 0x34a   :  { %v1554_v9 = vpop.eup %1553 }
 0x34b   :  { %v1376_v57 = vadd.f32 %v2326_v54, %v1337_v18  ;;  %v1299_v35 = vmul.f32 %v1554_v9, %v2248_v20  ;;  %v1239_v10 = vadd.f32 1e-06, %v1207_v29 }
 0x34c   :  { %v1168_v30 = vpop.xlane.xlu1 %1167 }
 0x34d   :  { %1408 = vst [vmem:[#allocation9 + $0x88] sm:$0xff] %v1376_v57  ;;  %v1338_v4 = vmul.f32 %v2320_v51, %v1299_v35  ;;  %1561 = vrsqrt.f32 %v1239_v10  ;;  %v1208_v60 = vmul.f32 0.0078125, %v1168_v30 }
 0x34e   :  { %v1556_v15 = vpop.eup %1555 }
 0x34f   :  { %v1377_v38 = vadd.f32 %v2326_v54, %v1338_v4  ;;  %v1300_v31 = vmul.f32 %v1556_v15, %v2253_v36  ;;  %v1240_v22 = vadd.f32 1e-06, %v1208_v60 }
 0x350   :  { %v1170_v63 = vpop.xlane.xlu0 %1169 }
 0x351   :  { %1409 = vst [vmem:[#allocation9 + $0x90] sm:$0xff] %v1377_v38  ;;  %v1339_v12 = vmul.f32 %v2320_v51, %v1300_v31  ;;  %1563 = vrsqrt.f32 %v1240_v22  ;;  %v1209_v23 = vmul.f32 0.0078125, %v1170_v63 }
 0x352   :  { %v1558_v20 = vpop.eup %1557 }
 0x353   :  { %v1378_v46 = vadd.f32 %v2326_v54, %v1339_v12  ;;  %v1301_v2 = vmul.f32 %v1558_v20, %v2258_v44  ;;  %v1241_v32 = vadd.f32 1e-06, %v1209_v23 }
 0x354   :  { %v1172_v41 = vpop.xlane.xlu1 %1171 }
 0x355   :  { %1410 = vst [vmem:[#allocation9 + $0x98] sm:$0xff] %v1378_v46  ;;  %v1340_v39 = vmul.f32 %v2320_v51, %v1301_v2  ;;  %1565 = vrsqrt.f32 %v1241_v32  ;;  %v1210_v33 = vmul.f32 0.0078125, %v1172_v41 }
 0x356   :  { %v1560_v36 = vpop.eup %1559 }
 0x357   :  { %v1379_v40 = vadd.f32 %v2326_v54, %v1340_v39  ;;  %v1302_v14 = vmul.f32 %v1560_v36, %v2263_v47  ;;  %v1242_v52 = vadd.f32 1e-06, %v1210_v33 }
 0x358   :  { %v1174_v43 = vpop.xlane.xlu0 %1173 }
 0x359   :  { %1411 = vst [vmem:[#allocation9 + $0xa0] sm:$0xff] %v1379_v40  ;;  %v1341_v24 = vmul.f32 %v2320_v51, %v1302_v14  ;;  %1567 = vrsqrt.f32 %v1242_v52  ;;  %v1211_v55 = vmul.f32 0.0078125, %v1174_v43 }
 0x35a   :  { %v1562_v44 = vpop.eup %1561 }
 0x35b   :  { %v1380_v42 = vadd.f32 %v2326_v54, %v1341_v24  ;;  %v1303_v53 = vmul.f32 %v1562_v44, %v2268_v50  ;;  %v1243_v58 = vadd.f32 1e-06, %v1211_v55 }
 0x35c   :  { %v1176_v16 = vpop.xlane.xlu1 %1175 }
 0x35d   :  { %1412 = vst [vmem:[#allocation9 + $0xa8] sm:$0xff] %v1380_v42  ;;  %v1342_v25 = vmul.f32 %v2320_v51, %v1303_v53  ;;  %1569 = vrsqrt.f32 %v1243_v58  ;;  %v1212_v45 = vmul.f32 0.0078125, %v1176_v16 }
 0x35e   :  { %v1564_v47 = vpop.eup %1563 }
 0x35f   :  { %v1381_v5 = vadd.f32 %v2326_v54, %v1342_v25  ;;  %v1304_v1 = vmul.f32 %v1564_v47, %v2273_v56  ;;  %v1244_v59 = vadd.f32 1e-06, %v1212_v45 }
 0x360   :  { %v1178_v61 = vpop.xlane.xlu0 %1177 }
 0x361   :  { %1413 = vst [vmem:[#allocation9 + $0xb0] sm:$0xff] %v1381_v5  ;;  %v1343_v26 = vmul.f32 %v2320_v51, %v1304_v1  ;;  %1571 = vrsqrt.f32 %v1244_v59  ;;  %v1213_v19 = vmul.f32 0.0078125, %v1178_v61 }
 0x362   :  { %v1566_v50 = vpop.eup %1565 }
 0x363   :  { %v1382_v48 = vadd.f32 %v2326_v54, %v1343_v26  ;;  %v1305_v8 = vmul.f32 %v1566_v50, %v2278_v62  ;;  %v1245_v27 = vadd.f32 1e-06, %v1213_v19 }
 0x364   :  { %v1180_v3 = vpop.xlane.xlu1 %1179 }
 0x365   :  { %1414 = vst [vmem:[#allocation9 + $0xb8] sm:$0xff] %v1382_v48  ;;  %v1344_v7 = vmul.f32 %v2320_v51, %v1305_v8  ;;  %1573 = vrsqrt.f32 %v1245_v27  ;;  %v1214_v13 = vmul.f32 0.0078125, %v1180_v3 }
 0x366   :  { %v1568_v56 = vpop.eup %1567 }
 0x367   :  { %v1383_v28 = vadd.f32 %v2326_v54, %v1344_v7  ;;  %v1306_v21 = vmul.f32 %v1568_v56, %v2283_v6  ;;  %v1246_v18 = vadd.f32 1e-06, %v1214_v13 }
 0x368   :  { %v1182_v29 = vpop.xlane.xlu0 %1181 }
 0x369   :  { %1415 = vst [vmem:[#allocation9 + $0xc0] sm:$0xff] %v1383_v28  ;;  %v1345_v9 = vmul.f32 %v2320_v51, %v1306_v21  ;;  %1575 = vrsqrt.f32 %v1246_v18  ;;  %v1215_v57 = vmul.f32 0.0078125, %v1182_v29 }
 0x36a   :  { %v1570_v62 = vpop.eup %1569 }
 0x36b   :  { %v1384_v35 = vadd.f32 %v2326_v54, %v1345_v9  ;;  %v1307_v10 = vmul.f32 %v1570_v62, %v2288_v11  ;;  %v1247_v30 = vadd.f32 1e-06, %v1215_v57 }
 0x36c   :  { %v1184_v4 = vpop.xlane.xlu1 %1183 }
 0x36d   :  { %1416 = vst [vmem:[#allocation9 + $0xc8] sm:$0xff] %v1384_v35  ;;  %v1346_v60 = vmul.f32 %v2320_v51, %v1307_v10  ;;  %1577 = vrsqrt.f32 %v1247_v30  ;;  %v1216_v15 = vmul.f32 0.0078125, %v1184_v4 }
 0x36e   :  { %v1572_v6 = vpop.eup %1571 }
 0x36f   :  { %v1385_v38 = vadd.f32 %v2326_v54, %v1346_v60  ;;  %v1308_v31 = vmul.f32 %v1572_v6, %v2293_v17  ;;  %v1248_v22 = vadd.f32 1e-06, %v1216_v15 }
 0x371   :  { %1417 = vst [vmem:[#allocation9 + $0xd0] sm:$0xff] %v1385_v38  ;;  %v1347_v63 = vmul.f32 %v2320_v51, %v1308_v31  ;;  %1579 = vrsqrt.f32 %v1248_v22 }
 0x372   :  { %v1574_v12 = vpop.eup %1573 }
 0x373   :  { %v1386_v11 = vadd.f32 %v2326_v54, %v1347_v63  ;;  %v1309_v23 = vmul.f32 %v1574_v12, %v2298_v34 }
 0x375   :  { %1418 = vst [vmem:[#allocation9 + $0xd8] sm:$0xff] %v1386_v11  ;;  %v1348_v20 = vmul.f32 %v2320_v51, %v1309_v23 }
 0x376   :  { %v1576_v46 = vpop.eup %1575 }
 0x377   :  { %v1387_v2 = vadd.f32 %v2326_v54, %v1348_v20  ;;  %v1310_v32 = vmul.f32 %v1576_v46, %v2303_v37 }
 0x379   :  { %1419 = vst [vmem:[#allocation9 + $0xe0] sm:$0xff] %v1387_v2  ;;  %v1349_v17 = vmul.f32 %v2320_v51, %v1310_v32 }
 0x37a   :  { %v1578_v41 = vpop.eup %1577 }
 0x37b   :  { %v1388_v39 = vadd.f32 %v2326_v54, %v1349_v17  ;;  %v1311_v33 = vmul.f32 %v1578_v41, %v2308_v0 }
 0x37d   :  { %1420 = vst [vmem:[#allocation9 + $0xe8] sm:$0xff] %v1388_v39  ;;  %v1350_v36 = vmul.f32 %v2320_v51, %v1311_v33 }
 0x37e   :  { %v1580_v34 = vpop.eup %1579 }
 0x37f   :  { %v1389_v40 = vadd.f32 %v2326_v54, %v1350_v36  ;;  %v1312_v14 = vmul.f32 %v1580_v34, %v2313_v49 }
 0x381   :  { %1421 = vst [vmem:[#allocation9 + $0xf0] sm:$0xff] %v1389_v40  ;;  %v1351_v37 = vmul.f32 %v2320_v51, %v1312_v14 }
 0x383   :  { %v1390_v52 = vadd.f32 %v2326_v54, %v1351_v37 }
 0x385   :  { %1422 = vst [vmem:[#allocation9 + $0xf8] sm:$0xff] %v1390_v52 }
 0x386   :  { %1654 = shalt.err (!%p1651_p5)
}
 0x387   :  { %1434 = dma.vmem_to_hbm [thread:$0]  %s1429_s6, 4096, %s2436_s7, [#allocation5], %s1673_s11, %s1673_s11, %s1674_s12  }
 0x388   :  { %1667 = dma.done.wait [#allocation5], 4096  }
 0x389   :  { %1668 = vsyncadd [#allocation5], 4294963200 }
 0x38a   :  { %1438 = vsyncpa [#allocation4], 1 }
 0x38b   :  { %1439 = vsyncpa [#allocation7], 1 }
 0x38c   :  { %1440 = vsyncpa [#allocation5], 1 }

</bundles_post_ra>
